<compile_context>
chip_gen: v5e
topology: v5e:2x2
jax: 0.10.0
libtpu: 0.0.40
codegen_flags: <defaults>
</compile_context>

<pallas_src>
import functools

import numpy as np
import jax
import jax.numpy as jnp
from jax.experimental import pallas as pl
from jax.experimental.pallas import tpu as pltpu

LANES = 128


def _round_up(n, m):
    return ((n + m - 1) // m) * m


def _hrm_kernel(a_ref, wtap_ref, bvec_ref, mask_ref,
                wse1_ref, bse1_ref, wse2_ref, bse2_ref, o_ref, *, Wp, MO):
    # a_ref   : (Mpad, 128) bf16  packed per-image slab, flat row pitch Wp.
    #           lanes [0:2C]  = un-shuffled + zero-ring-padded conv input
    #           lanes [2C:3C] = avg-pooled 1x1-conv input (centre-tap aligned)
    # wtap_ref: (9, 128, 128) bf16  per-tap weights, BN scales folded.
    #           every tap: rows[0:2C] -> cols[64:64+C]  (3x3 branch)
    #           centre tap additionally: rows[2C:3C] -> cols[0:C] (1x1 branch)
    # bvec_ref: (1, 128) f32   folded BN biases at cols [0:C] / [64:64+C]
    # mask_ref: (MO, 128) f32  1.0 on valid rows/cols, 0.0 on pitch padding
    # wse*/bse*: SE dense params zero-padded to 128 lanes; 1/(H*Wo) folded into
    #            wse1 so the masked SUM below equals the global average pool.
    # o_ref   : (MO, 128) bf16 lane-dense output slab (cols [0:C] are real)

    # ---- 3x3 conv + 1x1 conv: nine static-shift MXU dots, f32 accumulate ----
    pre = jnp.zeros((MO, LANES), jnp.float32)
    for kh in range(3):
        for kw in range(3):
            a_tap = a_ref[pl.ds(kh * Wp + kw, MO), :]
            pre += jnp.dot(a_tap, wtap_ref[kh * 3 + kw],
                           preferred_element_type=jnp.float32)

    # ---- per-branch BN bias + ReLU (single 128-lane block, one VPU pass) ----
    act = jnp.maximum(pre + bvec_ref[...], 0.0)

    # ---- merge branches: lanes [0:C] += lanes [64:64+C]  (XLU roll + add) ---
    # (outer ReLU of the module is redundant: both operands are >= 0)
    y = act + pltpu.roll(act, shift=64, axis=1)
    y = y * mask_ref[...]                    # zero pitch/rounding garbage

    # ---- SE block: global pool -> dense/ReLU/dense -> sigmoid -> rescale ----
    pooled = jnp.broadcast_to(jnp.sum(y, axis=0, keepdims=True), (8, LANES))
    z = jnp.maximum(jnp.dot(pooled, wse1_ref[...],
                            preferred_element_type=jnp.float32)
                    + bse1_ref[...], 0.0)
    s = jax.nn.sigmoid(jnp.dot(z, wse2_ref[...],
                               preferred_element_type=jnp.float32)
                       + bse2_ref[...])

    # ---- rescale; Dropout(p=0.1) is identity in eval mode -------------------
    o_ref[...] = (y * s[0:1, :]).astype(o_ref.dtype)


def hrm_block_forward(x_nchw, params, *, stride=2):
    B, C, H, W = x_nchw.shape
    Wo = W // stride
    C2 = C * stride
    assert W == Wo * stride
    # small-C lane packing: conv input (2C) + 1x1 input (C) share one 128-lane
    # block; the two branch outputs live at lanes [0:C] / [64:64+C].
    assert C2 + C <= LANES and C <= 64, "TODO(synk): large-C path not implemented"

    Wp, Hp = Wo + 2, H + 2                      # padded pitch / height
    MO = _round_up(H * Wp, 16)                  # output rows per image
    Mpad = _round_up(MO + 2 * Wp + 2, 16)       # slab rows (covers max shift)

    # ---------------- wrapper glue (layout only, no duplicated pixels) -------
    x = jnp.transpose(x_nchw, (0, 2, 3, 1)).astype(jnp.float32)       # NHWC
    # branch 1: AvgPool2d((1, stride)) -> W split (Wo, stride), adjacent pairs
    hx = x.reshape(B, H, Wo, stride, C).mean(axis=3)                  # (B,H,Wo,C)
    # branch 2: UnShuffle -> W split (stride, Wo) halves, channel = c*stride+r
    # (matches PyTorch view(B,C,H,ratios,Wo).permute(0,1,3,2,4) semantics)
    u = x.reshape(B, H, stride, Wo, C).transpose(0, 1, 3, 4, 2).reshape(B, H, Wo, C2)
    # one packed slab: [u | hx | 0]; the jnp.pad ring supplies the conv's SAME
    # zero padding and aligns hx with the centre tap (kh = kw = 1).
    inner = jnp.concatenate(
        [u, hx, jnp.zeros((B, H, Wo, LANES - C2 - C), jnp.float32)], axis=-1)
    a = jnp.pad(inner, ((0, 0), (1, 1), (1, 1), (0, 0))).reshape(B, Hp * Wp, LANES)
    a = jnp.pad(a, ((0, 0), (0, Mpad - Hp * Wp), (0, 0))).astype(jnp.bfloat16)

    # ---------------- folded weights ------------------------------------------
    w1s = params['w1'] * params['bn1_scale']                  # (C, C)
    w2s = params['w2'] * params['bn2_scale'][None, None]      # (3,3,C2,C) HWIO
    wtaps = jnp.zeros((9, LANES, LANES), jnp.float32)
    for kh in range(3):
        for kw in range(3):
            wtaps = wtaps.at[kh * 3 + kw, 0:C2, 64:64 + C].set(w2s[kh, kw])
    wtaps = wtaps.at[4, C2:C2 + C, 0:C].set(w1s)              # centre tap: 1x1
    wtaps = wtaps.astype(jnp.bfloat16)

    bvec = jnp.zeros((1, LANES), jnp.float32)
    bvec = bvec.at[:, 0:C].set(params['bn1_bias'])
    bvec = bvec.at[:, 64:64 + C].set(params['bn2_bias'])

    rows = np.arange(MO)
    valid = (rows < H * Wp) & ((rows % Wp) < Wo)
    mask = jnp.asarray(np.broadcast_to(valid[:, None], (MO, LANES)), jnp.float32)

    def pad2(v, r, c):
        return jnp.pad(v.astype(jnp.float32),
                       ((0, r - v.shape[0]), (0, c - v.shape[1])))

    wse1 = pad2(params['wse1'] / float(H * Wo), LANES, LANES)  # fold avg pool
    bse1 = pad2(params['bse1'], 1, LANES)
    wse2 = pad2(params['wse2'], LANES, LANES)
    bse2 = pad2(params['bse2'], 1, LANES)

    resident = (wtaps, bvec, mask, wse1, bse1, wse2, bse2)

    def res_spec(arr):
        nd = arr.ndim
        return pl.BlockSpec(arr.shape, lambda b, _nd=nd: (0,) * _nd)

    # per-step working set: double-buffered streaming slab + output, resident
    # weights (counted once, doubled defensively), a few f32 (MO,128)
    # intermediates, plus headroom; floored at 16 MiB, capped to v7x VMEM.
    est = (2 * (Mpad * LANES * 2 + MO * LANES * 2)
           + 2 * sum(int(v.size) * v.dtype.itemsize for v in resident)
           + 8 * MO * LANES * 4 + (4 << 20))
    vmem_bytes = int(min(max(est, 16 << 20), 64 << 20))

    kernel = functools.partial(_hrm_kernel, Wp=Wp, MO=MO)
    out_slab = pl.pallas_call(
        kernel,
        out_shape=jax.ShapeDtypeStruct((B, MO, LANES), jnp.bfloat16),
        grid=(B,),
        in_specs=[pl.BlockSpec((None, Mpad, LANES), lambda b: (b, 0, 0))]
                 + [res_spec(v) for v in resident],
        out_specs=pl.BlockSpec((None, MO, LANES), lambda b: (b, 0, 0)),
        compiler_params=pltpu.CompilerParams(
            dimension_semantics=("parallel",),      # megacore across images
            vmem_limit_bytes=vmem_bytes),
    )(a, *resident)

    out = out_slab[:, :H * Wp, :C].astype(jnp.float32)
    out = out.reshape(B, H, Wp, C)[:, :, :Wo, :]
    return jnp.transpose(out, (0, 3, 1, 2))                    # back to NCHW


def hrm_block_reference(x_nchw, p, *, stride=2):
    """Pure-JAX reference mirroring the PyTorch forward (eval mode, f32)."""
    hp = jax.lax.Precision.HIGHEST
    x = jnp.transpose(x_nchw, (0, 2, 3, 1)).astype(jnp.float32)
    B, H, W, C = x.shape
    Wo = W // stride
    hx = x.reshape(B, H, Wo, stride, C).mean(axis=3)
    h = jnp.einsum('bhwi,io->bhwo', hx, p['w1'], precision=hp)
    h = jax.nn.relu(h * p['bn1_scale'][0] + p['bn1_bias'][0])
    u = x.reshape(B, H, stride, Wo, C)
    u = jnp.transpose(u, (0, 1, 3, 4, 2)).reshape(B, H, Wo, stride * C)
    cu = jax.lax.conv_general_dilated(
        u, p['w2'], (1, 1), 'SAME',
        dimension_numbers=('NHWC', 'HWIO', 'NHWC'), precision=hp)
    cu = jax.nn.relu(cu * p['bn2_scale'][0] + p['bn2_bias'][0])
    y = jax.nn.relu(h + cu)
    pooled = y.mean(axis=(1, 2))
    z = jax.nn.relu(pooled @ p['wse1'] + p['bse1'][0])
    s = jax.nn.sigmoid(z @ p['wse2'] + p['bse2'][0])
    out = y * s[:, None, None, :]
    return jnp.transpose(out, (0, 3, 1, 2))


def make_params(key, C, stride=2, divide=4, eps=1e-5):
    C2 = C * stride
    Ch = C // divide
    ks = jax.random.split(key, 16)

    def fold_bn(kg, kb, km, kv, n):
        gamma = 1.0 + 0.1 * jax.random.normal(kg, (n,), jnp.float32)
        beta = 0.1 * jax.random.normal(kb, (n,), jnp.float32)
        mean = 0.1 * jax.random.normal(km, (n,), jnp.float32)
        var = jax.random.uniform(kv, (n,), jnp.float32, 0.5, 1.5)
        scale = gamma / jnp.sqrt(var + eps)
        bias = beta - mean * scale
        return scale.reshape(1, n), bias.reshape(1, n)

    bn1_scale, bn1_bias = fold_bn(ks[1], ks[2], ks[3], ks[4], C)
    bn2_scale, bn2_bias = fold_bn(ks[6], ks[7], ks[8], ks[9], C)
    return {
        # 1x1 conv weight stored as (in, out)
        'w1': 0.2 * jax.random.normal(ks[0], (C, C), jnp.float32),
        'bn1_scale': bn1_scale, 'bn1_bias': bn1_bias,
        # 3x3 conv weight stored as (kh, kw, in=2C, out=C)  (HWIO)
        'w2': 0.1 * jax.random.normal(ks[5], (3, 3, C2, C), jnp.float32),
        'bn2_scale': bn2_scale, 'bn2_bias': bn2_bias,
        # SE Linears stored as (in, out) + (1, out) bias
        'wse1': 0.3 * jax.random.normal(ks[10], (C, Ch), jnp.float32),
        'bse1': 0.1 * jax.random.normal(ks[11], (1, Ch), jnp.float32),
        'wse2': 0.3 * jax.random.normal(ks[12], (Ch, C), jnp.float32),
        'bse2': 0.1 * jax.random.normal(ks[13], (1, C), jnp.float32),
    }


if __name__ == "__main__":
    B, C, H, W = 2, 8, 8, 16        # in_planes=8, stride=2, kernel_size=3
    key = jax.random.PRNGKey(0)
    kx, kp = jax.random.split(key)
    x = jax.random.normal(kx, (B, C, H, W), jnp.float32)
    params = make_params(kp, C)

    out = jax.block_until_ready(jax.jit(hrm_block_forward)(x, params))
    ref = jax.block_until_ready(hrm_block_reference(x, params))

    assert out.shape == (B, C, H, W // 2), out.shape
    # bf16 MXU operands + bf16 output slab vs f32 HIGHEST reference.
    max_err = float(jnp.max(jnp.abs(out - ref)))
    assert jnp.allclose(out, ref, atol=5e-2, rtol=5e-2), max_err

    print("KERNEL_OK")
</pallas_src>

<mosaic_0001>
module attributes {stable_mosaic.version = 11 : i64} {
  func.func @_hrm_kernel(%arg0: i32, %arg1: memref<1x112x128xbf16, #tpu.memory_space<vmem>>, %arg2: memref<9x128x128xbf16, #tpu.memory_space<vmem>>, %arg3: memref<1x128xf32, #tpu.memory_space<vmem>>, %arg4: memref<80x128xf32, #tpu.memory_space<vmem>>, %arg5: memref<128x128xf32, #tpu.memory_space<vmem>>, %arg6: memref<1x128xf32, #tpu.memory_space<vmem>>, %arg7: memref<128x128xf32, #tpu.memory_space<vmem>>, %arg8: memref<1x128xf32, #tpu.memory_space<vmem>>, %arg9: memref<1x80x128xbf16, #tpu.memory_space<vmem>>) attributes {dimension_semantics = [#tpu.dimension_semantics<parallel>], iteration_bounds = array<i64: 2>, scalar_prefetch = 0 : i64, scratch_operands = 0 : i64, tpu.core_type = #tpu.core_type<tc>, window_params = [{transform_indices = @transform_0, window_bounds = array<i64: 1, 112, 128>}, {pipeline_mode = #tpu.pipeline_mode<synchronous>, transform_indices = @transform_1, window_bounds = array<i64: 9, 128, 128>}, {pipeline_mode = #tpu.pipeline_mode<synchronous>, transform_indices = @transform_2, window_bounds = array<i64: 1, 128>}, {pipeline_mode = #tpu.pipeline_mode<synchronous>, transform_indices = @transform_3, window_bounds = array<i64: 80, 128>}, {pipeline_mode = #tpu.pipeline_mode<synchronous>, transform_indices = @transform_4, window_bounds = array<i64: 128, 128>}, {pipeline_mode = #tpu.pipeline_mode<synchronous>, transform_indices = @transform_5, window_bounds = array<i64: 1, 128>}, {pipeline_mode = #tpu.pipeline_mode<synchronous>, transform_indices = @transform_6, window_bounds = array<i64: 128, 128>}, {pipeline_mode = #tpu.pipeline_mode<synchronous>, transform_indices = @transform_7, window_bounds = array<i64: 1, 128>}, {transform_indices = @transform_8, window_bounds = array<i64: 1, 80, 128>}]} {
    %cst = arith.constant 0.000000e+00 : f32
    %0 = vector.broadcast %cst : f32 to vector<80x128xf32>
    %c0 = arith.constant 0 : index
    %c0_0 = arith.constant 0 : index
    %c0_1 = arith.constant 0 : index
    %1 = vector.load %arg1[%c0, %c0_0, %c0_1] : memref<1x112x128xbf16, #tpu.memory_space<vmem>>, vector<1x80x128xbf16>
    %2 = vector.shape_cast %1 : vector<1x80x128xbf16> to vector<80x128xbf16>
    %c0_2 = arith.constant 0 : index
    %c0_3 = arith.constant 0 : index
    %c0_4 = arith.constant 0 : index
    %3 = vector.load %arg2[%c0_2, %c0_3, %c0_4] : memref<9x128x128xbf16, #tpu.memory_space<vmem>>, vector<1x128x128xbf16>
    %4 = vector.shape_cast %3 : vector<1x128x128xbf16> to vector<128x128xbf16>
    %cst_5 = arith.constant dense<0.000000e+00> : vector<80x128xf32>
    %5 = tpu.matmul %2, %4, %cst_5 {dimension_numbers = #tpu.dot_dimension_numbers<[1], [0], [0], [1], [0, 0, 1, 1], [], []>} : vector<80x128xbf16>, vector<128x128xbf16>, vector<80x128xf32> -> vector<80x128xf32>
    %6 = arith.addf %0, %5 : vector<80x128xf32>
    %c0_6 = arith.constant 0 : index
    %c1 = arith.constant 1 : index
    %c0_7 = arith.constant 0 : index
    %7 = vector.load %arg1[%c0_6, %c1, %c0_7] : memref<1x112x128xbf16, #tpu.memory_space<vmem>>, vector<1x80x128xbf16>
    %8 = vector.shape_cast %7 : vector<1x80x128xbf16> to vector<80x128xbf16>
    %c1_8 = arith.constant 1 : index
    %c0_9 = arith.constant 0 : index
    %c0_10 = arith.constant 0 : index
    %9 = vector.load %arg2[%c1_8, %c0_9, %c0_10] : memref<9x128x128xbf16, #tpu.memory_space<vmem>>, vector<1x128x128xbf16>
    %10 = vector.shape_cast %9 : vector<1x128x128xbf16> to vector<128x128xbf16>
    %cst_11 = arith.constant dense<0.000000e+00> : vector<80x128xf32>
    %11 = tpu.matmul %8, %10, %cst_11 {dimension_numbers = #tpu.dot_dimension_numbers<[1], [0], [0], [1], [0, 0, 1, 1], [], []>} : vector<80x128xbf16>, vector<128x128xbf16>, vector<80x128xf32> -> vector<80x128xf32>
    %12 = arith.addf %6, %11 : vector<80x128xf32>
    %c0_12 = arith.constant 0 : index
    %c2 = arith.constant 2 : index
    %c0_13 = arith.constant 0 : index
    %13 = vector.load %arg1[%c0_12, %c2, %c0_13] : memref<1x112x128xbf16, #tpu.memory_space<vmem>>, vector<1x80x128xbf16>
    %14 = vector.shape_cast %13 : vector<1x80x128xbf16> to vector<80x128xbf16>
    %c2_14 = arith.constant 2 : index
    %c0_15 = arith.constant 0 : index
    %c0_16 = arith.constant 0 : index
    %15 = vector.load %arg2[%c2_14, %c0_15, %c0_16] : memref<9x128x128xbf16, #tpu.memory_space<vmem>>, vector<1x128x128xbf16>
    %16 = vector.shape_cast %15 : vector<1x128x128xbf16> to vector<128x128xbf16>
    %cst_17 = arith.constant dense<0.000000e+00> : vector<80x128xf32>
    %17 = tpu.matmul %14, %16, %cst_17 {dimension_numbers = #tpu.dot_dimension_numbers<[1], [0], [0], [1], [0, 0, 1, 1], [], []>} : vector<80x128xbf16>, vector<128x128xbf16>, vector<80x128xf32> -> vector<80x128xf32>
    %18 = arith.addf %12, %17 : vector<80x128xf32>
    %c0_18 = arith.constant 0 : index
    %c10 = arith.constant 10 : index
    %c0_19 = arith.constant 0 : index
    %19 = vector.load %arg1[%c0_18, %c10, %c0_19] : memref<1x112x128xbf16, #tpu.memory_space<vmem>>, vector<1x80x128xbf16>
    %20 = vector.shape_cast %19 : vector<1x80x128xbf16> to vector<80x128xbf16>
    %c3 = arith.constant 3 : index
    %c0_20 = arith.constant 0 : index
    %c0_21 = arith.constant 0 : index
    %21 = vector.load %arg2[%c3, %c0_20, %c0_21] : memref<9x128x128xbf16, #tpu.memory_space<vmem>>, vector<1x128x128xbf16>
    %22 = vector.shape_cast %21 : vector<1x128x128xbf16> to vector<128x128xbf16>
    %cst_22 = arith.constant dense<0.000000e+00> : vector<80x128xf32>
    %23 = tpu.matmul %20, %22, %cst_22 {dimension_numbers = #tpu.dot_dimension_numbers<[1], [0], [0], [1], [0, 0, 1, 1], [], []>} : vector<80x128xbf16>, vector<128x128xbf16>, vector<80x128xf32> -> vector<80x128xf32>
    %24 = arith.addf %18, %23 : vector<80x128xf32>
    %c0_23 = arith.constant 0 : index
    %c11 = arith.constant 11 : index
    %c0_24 = arith.constant 0 : index
    %25 = vector.load %arg1[%c0_23, %c11, %c0_24] : memref<1x112x128xbf16, #tpu.memory_space<vmem>>, vector<1x80x128xbf16>
    %26 = vector.shape_cast %25 : vector<1x80x128xbf16> to vector<80x128xbf16>
    %c4 = arith.constant 4 : index
    %c0_25 = arith.constant 0 : index
    %c0_26 = arith.constant 0 : index
    %27 = vector.load %arg2[%c4, %c0_25, %c0_26] : memref<9x128x128xbf16, #tpu.memory_space<vmem>>, vector<1x128x128xbf16>
    %28 = vector.shape_cast %27 : vector<1x128x128xbf16> to vector<128x128xbf16>
    %cst_27 = arith.constant dense<0.000000e+00> : vector<80x128xf32>
    %29 = tpu.matmul %26, %28, %cst_27 {dimension_numbers = #tpu.dot_dimension_numbers<[1], [0], [0], [1], [0, 0, 1, 1], [], []>} : vector<80x128xbf16>, vector<128x128xbf16>, vector<80x128xf32> -> vector<80x128xf32>
    %30 = arith.addf %24, %29 : vector<80x128xf32>
    %c0_28 = arith.constant 0 : index
    %c12 = arith.constant 12 : index
    %c0_29 = arith.constant 0 : index
    %31 = vector.load %arg1[%c0_28, %c12, %c0_29] : memref<1x112x128xbf16, #tpu.memory_space<vmem>>, vector<1x80x128xbf16>
    %32 = vector.shape_cast %31 : vector<1x80x128xbf16> to vector<80x128xbf16>
    %c5 = arith.constant 5 : index
    %c0_30 = arith.constant 0 : index
    %c0_31 = arith.constant 0 : index
    %33 = vector.load %arg2[%c5, %c0_30, %c0_31] : memref<9x128x128xbf16, #tpu.memory_space<vmem>>, vector<1x128x128xbf16>
    %34 = vector.shape_cast %33 : vector<1x128x128xbf16> to vector<128x128xbf16>
    %cst_32 = arith.constant dense<0.000000e+00> : vector<80x128xf32>
    %35 = tpu.matmul %32, %34, %cst_32 {dimension_numbers = #tpu.dot_dimension_numbers<[1], [0], [0], [1], [0, 0, 1, 1], [], []>} : vector<80x128xbf16>, vector<128x128xbf16>, vector<80x128xf32> -> vector<80x128xf32>
    %36 = arith.addf %30, %35 : vector<80x128xf32>
    %c0_33 = arith.constant 0 : index
    %c20 = arith.constant 20 : index
    %c0_34 = arith.constant 0 : index
    %37 = vector.load %arg1[%c0_33, %c20, %c0_34] : memref<1x112x128xbf16, #tpu.memory_space<vmem>>, vector<1x80x128xbf16>
    %38 = vector.shape_cast %37 : vector<1x80x128xbf16> to vector<80x128xbf16>
    %c6 = arith.constant 6 : index
    %c0_35 = arith.constant 0 : index
    %c0_36 = arith.constant 0 : index
    %39 = vector.load %arg2[%c6, %c0_35, %c0_36] : memref<9x128x128xbf16, #tpu.memory_space<vmem>>, vector<1x128x128xbf16>
    %40 = vector.shape_cast %39 : vector<1x128x128xbf16> to vector<128x128xbf16>
    %cst_37 = arith.constant dense<0.000000e+00> : vector<80x128xf32>
    %41 = tpu.matmul %38, %40, %cst_37 {dimension_numbers = #tpu.dot_dimension_numbers<[1], [0], [0], [1], [0, 0, 1, 1], [], []>} : vector<80x128xbf16>, vector<128x128xbf16>, vector<80x128xf32> -> vector<80x128xf32>
    %42 = arith.addf %36, %41 : vector<80x128xf32>
    %c0_38 = arith.constant 0 : index
    %c21 = arith.constant 21 : index
    %c0_39 = arith.constant 0 : index
    %43 = vector.load %arg1[%c0_38, %c21, %c0_39] : memref<1x112x128xbf16, #tpu.memory_space<vmem>>, vector<1x80x128xbf16>
    %44 = vector.shape_cast %43 : vector<1x80x128xbf16> to vector<80x128xbf16>
    %c7 = arith.constant 7 : index
    %c0_40 = arith.constant 0 : index
    %c0_41 = arith.constant 0 : index
    %45 = vector.load %arg2[%c7, %c0_40, %c0_41] : memref<9x128x128xbf16, #tpu.memory_space<vmem>>, vector<1x128x128xbf16>
    %46 = vector.shape_cast %45 : vector<1x128x128xbf16> to vector<128x128xbf16>
    %cst_42 = arith.constant dense<0.000000e+00> : vector<80x128xf32>
    %47 = tpu.matmul %44, %46, %cst_42 {dimension_numbers = #tpu.dot_dimension_numbers<[1], [0], [0], [1], [0, 0, 1, 1], [], []>} : vector<80x128xbf16>, vector<128x128xbf16>, vector<80x128xf32> -> vector<80x128xf32>
    %48 = arith.addf %42, %47 : vector<80x128xf32>
    %c0_43 = arith.constant 0 : index
    %c22 = arith.constant 22 : index
    %c0_44 = arith.constant 0 : index
    %49 = vector.load %arg1[%c0_43, %c22, %c0_44] : memref<1x112x128xbf16, #tpu.memory_space<vmem>>, vector<1x80x128xbf16>
    %50 = vector.shape_cast %49 : vector<1x80x128xbf16> to vector<80x128xbf16>
    %c8 = arith.constant 8 : index
    %c0_45 = arith.constant 0 : index
    %c0_46 = arith.constant 0 : index
    %51 = vector.load %arg2[%c8, %c0_45, %c0_46] : memref<9x128x128xbf16, #tpu.memory_space<vmem>>, vector<1x128x128xbf16>
    %52 = vector.shape_cast %51 : vector<1x128x128xbf16> to vector<128x128xbf16>
    %cst_47 = arith.constant dense<0.000000e+00> : vector<80x128xf32>
    %53 = tpu.matmul %50, %52, %cst_47 {dimension_numbers = #tpu.dot_dimension_numbers<[1], [0], [0], [1], [0, 0, 1, 1], [], []>} : vector<80x128xbf16>, vector<128x128xbf16>, vector<80x128xf32> -> vector<80x128xf32>
    %54 = arith.addf %48, %53 : vector<80x128xf32>
    %c0_48 = arith.constant 0 : index
    %c0_49 = arith.constant 0 : index
    %55 = vector.load %arg3[%c0_48, %c0_49] : memref<1x128xf32, #tpu.memory_space<vmem>>, vector<1x128xf32>
    %56 = vector.broadcast %55 : vector<1x128xf32> to vector<80x128xf32>
    %57 = arith.addf %54, %56 : vector<80x128xf32>
    %cst_50 = arith.constant 0.000000e+00 : f32
    %58 = vector.broadcast %cst_50 : f32 to vector<80x128xf32>
    %59 = arith.maximumf %57, %58 : vector<80x128xf32>
    %c64_i32 = arith.constant 64 : i32
    %60 = tpu.dynamic_rotate %59 by %c64_i32 dim 1 : vector<80x128xf32>, i32 -> vector<80x128xf32>
    %61 = arith.addf %59, %60 : vector<80x128xf32>
    %c0_51 = arith.constant 0 : index
    %c0_52 = arith.constant 0 : index
    %62 = vector.load %arg4[%c0_51, %c0_52] : memref<80x128xf32, #tpu.memory_space<vmem>>, vector<80x128xf32>
    %63 = arith.mulf %61, %62 : vector<80x128xf32>
    %cst_53 = arith.constant dense<0.000000e+00> : vector<128xf32>
    %64 = vector.multi_reduction <add>, %63, %cst_53 [0] : vector<80x128xf32> to vector<128xf32>
    %65 = vector.shape_cast %64 : vector<128xf32> to vector<1x128xf32>
    %66 = vector.shape_cast %65 : vector<1x128xf32> to vector<1x128xf32>
    %67 = vector.broadcast %66 : vector<1x128xf32> to vector<8x128xf32>
    %c0_54 = arith.constant 0 : index
    %c0_55 = arith.constant 0 : index
    %68 = vector.load %arg5[%c0_54, %c0_55] : memref<128x128xf32, #tpu.memory_space<vmem>>, vector<128x128xf32>
    %cst_56 = arith.constant dense<0.000000e+00> : vector<8x128xf32>
    %69 = tpu.matmul %67, %68, %cst_56 {dimension_numbers = #tpu.dot_dimension_numbers<[1], [0], [0], [1], [0, 0, 1, 1], [], []>} : vector<8x128xf32>, vector<128x128xf32>, vector<8x128xf32> -> vector<8x128xf32>
    %c0_57 = arith.constant 0 : index
    %c0_58 = arith.constant 0 : index
    %70 = vector.load %arg6[%c0_57, %c0_58] : memref<1x128xf32, #tpu.memory_space<vmem>>, vector<1x128xf32>
    %71 = vector.broadcast %70 : vector<1x128xf32> to vector<8x128xf32>
    %72 = arith.addf %69, %71 : vector<8x128xf32>
    %cst_59 = arith.constant 0.000000e+00 : f32
    %73 = vector.broadcast %cst_59 : f32 to vector<8x128xf32>
    %74 = arith.maximumf %72, %73 : vector<8x128xf32>
    %c0_60 = arith.constant 0 : index
    %c0_61 = arith.constant 0 : index
    %75 = vector.load %arg7[%c0_60, %c0_61] : memref<128x128xf32, #tpu.memory_space<vmem>>, vector<128x128xf32>
    %cst_62 = arith.constant dense<0.000000e+00> : vector<8x128xf32>
    %76 = tpu.matmul %74, %75, %cst_62 {dimension_numbers = #tpu.dot_dimension_numbers<[1], [0], [0], [1], [0, 0, 1, 1], [], []>} : vector<8x128xf32>, vector<128x128xf32>, vector<8x128xf32> -> vector<8x128xf32>
    %c0_63 = arith.constant 0 : index
    %c0_64 = arith.constant 0 : index
    %77 = vector.load %arg8[%c0_63, %c0_64] : memref<1x128xf32, #tpu.memory_space<vmem>>, vector<1x128xf32>
    %78 = vector.broadcast %77 : vector<1x128xf32> to vector<8x128xf32>
    %79 = arith.addf %76, %78 : vector<8x128xf32>
    %80 = arith.negf %79 : vector<8x128xf32>
    %81 = math.exp %80 : vector<8x128xf32>
    %cst_65 = arith.constant 1.000000e+00 : f32
    %82 = vector.broadcast %cst_65 : f32 to vector<8x128xf32>
    %83 = arith.addf %82, %81 : vector<8x128xf32>
    %84 = arith.divf %82, %83 : vector<8x128xf32>
    %85 = vector.extract_strided_slice %84 {offsets = [0, 0], sizes = [1, 128], strides = [1, 1]} : vector<8x128xf32> to vector<1x128xf32>
    %86 = vector.broadcast %85 : vector<1x128xf32> to vector<80x128xf32>
    %87 = arith.mulf %63, %86 : vector<80x128xf32>
    %88 = arith.truncf %87 : vector<80x128xf32> to vector<80x128xbf16>
    %c0_66 = arith.constant 0 : index
    %c0_67 = arith.constant 0 : index
    %c0_68 = arith.constant 0 : index
    %89 = vector.load %arg9[%c0_66, %c0_67, %c0_68] : memref<1x80x128xbf16, #tpu.memory_space<vmem>>, vector<1x80x128xbf16>
    %90 = vector.shape_cast %89 : vector<1x80x128xbf16> to vector<80x128xbf16>
    %91 = vector.shape_cast %88 : vector<80x128xbf16> to vector<1x80x128xbf16>
    tpu.vector_store %arg9[%c0_66, %c0_67, %c0_68], %91 {strides = array<i32>} : memref<1x80x128xbf16, #tpu.memory_space<vmem>>, vector<1x80x128xbf16>,
    return
  }
  func.func @transform_0(%arg0: i32) -> (i32, i32, i32) {
    %c0_i32 = arith.constant 0 : i32
    %c0_i32_0 = arith.constant 0 : i32
    %c0_i32_1 = arith.constant 0 : i32
    return %arg0, %c0_i32, %c0_i32_0 : i32, i32, i32
  }
  func.func @transform_1(%arg0: i32) -> (i32, i32, i32) {
    %c0_i32 = arith.constant 0 : i32
    %c0_i32_0 = arith.constant 0 : i32
    %c0_i32_1 = arith.constant 0 : i32
    %c0_i32_2 = arith.constant 0 : i32
    return %c0_i32, %c0_i32_0, %c0_i32_1 : i32, i32, i32
  }
  func.func @transform_2(%arg0: i32) -> (i32, i32) {
    %c0_i32 = arith.constant 0 : i32
    %c0_i32_0 = arith.constant 0 : i32
    %c0_i32_1 = arith.constant 0 : i32
    return %c0_i32, %c0_i32_0 : i32, i32
  }
  func.func @transform_3(%arg0: i32) -> (i32, i32) {
    %c0_i32 = arith.constant 0 : i32
    %c0_i32_0 = arith.constant 0 : i32
    %c0_i32_1 = arith.constant 0 : i32
    return %c0_i32, %c0_i32_0 : i32, i32
  }
  func.func @transform_4(%arg0: i32) -> (i32, i32) {
    %c0_i32 = arith.constant 0 : i32
    %c0_i32_0 = arith.constant 0 : i32
    %c0_i32_1 = arith.constant 0 : i32
    return %c0_i32, %c0_i32_0 : i32, i32
  }
  func.func @transform_5(%arg0: i32) -> (i32, i32) {
    %c0_i32 = arith.constant 0 : i32
    %c0_i32_0 = arith.constant 0 : i32
    %c0_i32_1 = arith.constant 0 : i32
    return %c0_i32, %c0_i32_0 : i32, i32
  }
  func.func @transform_6(%arg0: i32) -> (i32, i32) {
    %c0_i32 = arith.constant 0 : i32
    %c0_i32_0 = arith.constant 0 : i32
    %c0_i32_1 = arith.constant 0 : i32
    return %c0_i32, %c0_i32_0 : i32, i32
  }
  func.func @transform_7(%arg0: i32) -> (i32, i32) {
    %c0_i32 = arith.constant 0 : i32
    %c0_i32_0 = arith.constant 0 : i32
    %c0_i32_1 = arith.constant 0 : i32
    return %c0_i32, %c0_i32_0 : i32, i32
  }
  func.func @transform_8(%arg0: i32) -> (i32, i32, i32) {
    %c0_i32 = arith.constant 0 : i32
    %c0_i32_0 = arith.constant 0 : i32
    %c0_i32_1 = arith.constant 0 : i32
    return %arg0, %c0_i32, %c0_i32_0 : i32, i32, i32
  }
}

</mosaic_0001>

<bundles_post_ra>
// kernel: hrm_block_forward.1
= control target key start
LH: loop header
LB: loop body
LE: loop exit
PB: predicated region body
PF: predicated region fallthrough
CT: control target
= control target key end

     0   :  { %s2616_s27 = smov 0   ;;  %s3341_s0 = inlined_call_operand.vmem [shape: bf16[2,112,128], index: 0, kind: input, shape index: {}]   ;;  %s3342_s1 = inlined_call_operand.vmem [shape: bf16[9,128,128], index: 1, kind: input, shape index: {}]   ;;  %s3343_s2 = inlined_call_operand.vmem [shape: f32[1,128], index: 2, kind: input, shape index: {}]   ;;  %s3344_s3 = inlined_call_operand.vmem [shape: f32[80,128], index: 3, kind: input, shape index: {}]   ;;  %s3345_s4 = inlined_call_operand.vmem [shape: f32[128,128], index: 4, kind: input, shape index: {}]   ;;  %s3346_s5 = inlined_call_operand.vmem [shape: f32[1,128], index: 5, kind: input, shape index: {}]   ;;  %s3347_s6 = inlined_call_operand.vmem [shape: f32[128,128], index: 6, kind: input, shape index: {}]   ;;  %s3348_s7 = inlined_call_operand.vmem [shape: f32[1,128], index: 7, kind: input, shape index: {}]   ;;  %s3349_s8 = inlined_call_operand.vmem [shape: bf16[2,80,128], index: 8, kind: output, shape index: {}]  }
   0x1 LB: > { %s1934_s28 = sadd.s32 4294967295, %s2568_s27   ;;  %p1938_p0 = scmp.ge.s32.totalorder %s2568_s27, 1  ;;  %s2568_s27 = sphi %s2616_s27, %s18_s27  }
   0x2   : > { %p262_p1 = scmp.lt.s32.totalorder %s2568_s27, 3 }
   0x4   : > { %p263_p2 = pnand %p1938_p0, %p262_p1 }
   0x5   : > { %p296_p3 = scmp.lt.s32.totalorder (!%p263_p2), %s1934_s28, 1  ;;  %s2570_s22 = smov (!%p263_p2), 64  }
   0x6   : > { %266 = sbr.rel (%p263_p2) target bundleno = 806 (0x326), region = 52 }
   0xb   : > { %v2427_v0 = vld [vmem:[%s3342_s1 + $0x78] sm:$0xff]  ;;  %v2426_v1 = vld [vmem:[%s3342_s1 + $0x70] sm:$0xff]  ;;  %s3351_s28 = smov (!%p296_p3, %s1934_s28), 1  ;;  %v2425_v4 = vld [vmem:[%s3342_s1 + $0x68] sm:$0xff]  ;;  %vm378_vm0 = vsmask.f32 7424 }
   0xc   : > { %476 = vmatpush.bf16.msra.mxu0 %v2427_v0  ;;  %2528 = vmatpush.bf16.msra.mxu1 %v2427_v0  ;;  %v2435_v2 = vld [vmem:[%s3342_s1 + $0xb8] sm:$0xff]  ;;  %v2434_v3 = vld [vmem:[%s3342_s1 + $0xb0] sm:$0xff]  ;;  %v2433_v5 = vld [vmem:[%s3342_s1 + $0xa8] sm:$0xff]  ;;  %s2544_s19 = smul.u32 56, %s3351_s28  ;;  %vm618_vm1 = vcmask 1046528   ;;  %vm1084_vm3 = vcmask 1045504  }
   0xd   : > { %2529 = vmatpush.bf16.msra.mxu3 %v2427_v0  ;;  %683 = vmatpush.bf16.msra.mxu2 %v2435_v2  ;;  %v2424_v6 = vld [vmem:[%s3342_s1 + $0x60] sm:$0xff]  ;;  %v2423_v8 = vld [vmem:[%s3342_s1 + $0x58] sm:$0xff]  ;;  %v2422_v14 = vld [vmem:[%s3342_s1 + $0x50] sm:$0xff]  ;;  %vm912_vm2 = vsmask.f32 6400  ;;  %vm1550_vm4 = vcmask 1044480  }
   0xe   : > { %s2651_s24 = scalar_lea.vmem %s3341_s0, %s2544_s19  ;;  %v2432_v7 = vld [vmem:[%s3342_s1 + $0xa0] sm:$0xff]  ;;  %v2431_v12 = vld [vmem:[%s3342_s1 + $0x98] sm:$0xff]  ;;  %v2430_v19 = vld [vmem:[%s3342_s1 + $0x90] sm:$0xff]  ;;  %vm1378_vm5 = vsmask.f32 5376  ;;  %s2545_s12 = smul.u32 40, %s3351_s28 }
   0xf   : > { %v2660_v9 = vld [vmem:[%s2651_s24 + $0x10] sm:$0xff]  ;;  %v2663_v10 = vld [vmem:[%s2651_s24] sm:$0xff]   ;;  %v2666_v11 = vld [vmem:[%s2651_s24 + $0x18] sm:$0xff] }
  0x10   : > { %477 = vmatpush.bf16.msra.mxu0 %v2426_v1  ;;  %2530 = vmatpush.bf16.msra.mxu1 %v2426_v1  ;;  %v2672_v13 = vld [vmem:[%s2651_s24 + $0x8] sm:$0xff]  ;;  %v382_v15 = vshll.u32 %v2663_v10, 16  ;;  %v395_v16 = vshll.u32 %v2660_v9, 16  ;;  %v2680_v17 = vld [vmem:[%s2651_s24 + $0x20] sm:$0xff]  ;;  %v403_v18 = vshll.u32 %v2666_v11, 16  ;;  %v380_v20 = vshrl.u32 %v2663_v10, 16  ;;  %s305_s15 = scalar_lea.vmem %s3349_s8, %s2545_s12 }
  0x11   : > { %2531 = vmatpush.bf16.msra.mxu3 %v2426_v1  ;;  %684 = vmatpush.bf16.msra.mxu2 %v2434_v3  ;;  %v387_v21 = vshll.u32 %v2672_v13, 16  ;;  %v2421_v22 = vld [vmem:[%s3342_s1 + $0x48] sm:$0xff]  ;;  %v407_v24 = vshrl.u32 %v2666_v11, 16  ;;  %v399_v26 = vshrl.u32 %v2660_v9, 16  ;;  %v411_v28 = vshll.u32 %v2680_v17, 16  ;;  %v2420_v32 = vld [vmem:[%s3342_s1 + $0x40] sm:$0xff] }
  0x12   : > { %v384_v23 = vrot.slane %v382_v15, 1  ;;  %v2692_v25 = vrot.slane %v395_v16, 1  ;;  %v405_v27 = vrot.slane %v403_v18, 1  ;;  %v2521_v29 = vld [vmem:[%s2651_s24] sm:$0xf0]  ;;  %v2429_v31 = vld [vmem:[%s3342_s1 + $0x88] sm:$0xff] }
  0x13   : > { %v2522_v30 = vld [vmem:[%s2651_s24] sm:$0xe]  ;;  %v389_v34 = vrot.slane %v387_v21, 1  ;;  %v2419_v37 = vld [vmem:[%s3342_s1 + $0x38] sm:$0xff]  ;;  %v413_v39 = vrot.slane %v411_v28, 1  ;;  %v620_v47 = vrot.slane %v2672_v13, 1 }
  0x14   : > { %478 = vmatpush.bf16.msra.mxu0 %v2425_v4  ;;  %2532 = vmatpush.bf16.msra.mxu1 %v2425_v4  ;;  %v385_v33 = vor.u32 %v384_v23, %v380_v20  ;;  %v401_v35 = vor.u32 %v399_v26, %v2692_v25  ;;  %v2523_v36 = vor.u32 %v2522_v30, %v2521_v29  ;;  %v2447_v40 = vld [vmem:[%s3342_s1 + $0xf8] sm:$0xff]  ;;  %v332_v42 = vld [vmem:[%s2651_s24 + $0x28] sm:$0x1]  ;;  %v2428_v45 = vld [vmem:[%s3342_s1 + $0x80] sm:$0xff]  ;;  %v391_v60 = vshrl.u32 %v2672_v13, 16 }
  0x15   : > { %2533 = vmatpush.bf16.msra.mxu3 %v2425_v4  ;;  %685 = vmatpush.bf16.msra.mxu2 %v2433_v5  ;;  %v409_v38 = vor.u32 %v407_v24, %v405_v27  ;;  %v2455_v41 = vld [vmem:[%s3342_s1 + $0x138] sm:$0xff]  ;;  %v2418_v49 = vld [vmem:[%s3342_s1 + $0x30] sm:$0xff]  ;;  %v371_v50 = vunpack.c.l.b16 %v332_v42  ;;  %v2417_v55 = vld [vmem:[%s3342_s1 + $0x28] sm:$0xff]  ;;  %v415_v0 = vshrl.u32 %v2680_v17, 16  ;;  %v622_v20 = vrot.slane %v2660_v9, 1 }
  0x16   : > { %v390_v43 = vsel %vm378_vm0, %v385_v33, %v389_v34  ;;  %v406_v44 = vsel %vm378_vm0, %v401_v35, %v405_v27  ;;  %v619_v46 = vrot.slane %v2523_v36, 1  ;;  %v2475_v51 = vld [vmem:[%s3342_s1 + $0x1b8] sm:$0xff]  ;;  %v2446_v52 = vld [vmem:[%s3342_s1 + $0xf0] sm:$0xff]  ;;  %v2445_v58 = vld [vmem:[%s3342_s1 + $0xe8] sm:$0xff] }
  0x17   : > { %v414_v48 = vsel %vm378_vm0, %v409_v38, %v413_v39  ;;  %v2454_v53 = vld [vmem:[%s3342_s1 + $0x130] sm:$0xff]  ;;  %v2740_v56 = vpack.c.b16 %v371_v50, %v371_v50  ;;  %v2453_v59 = vld [vmem:[%s3342_s1 + $0x128] sm:$0xff]  ;;  %v727_v61 = vld [vmem:[%s2651_s24 + $0x4] sm:$0xe]  ;;  %v623_v29 = vsel %vm618_vm1, %v620_v47, %v622_v20 }
  0x18   : > { %479 = vmatpush.bf16.msra.mxu0 %v2424_v6  ;;  %2534 = vmatpush.bf16.msra.mxu1 %v2424_v6  ;;  %v621_v54 = vsel %vm618_vm1, %v619_v46, %v620_v47  ;;  %v2474_v57 = vld [vmem:[%s3342_s1 + $0x1b0] sm:$0xff]  ;;  %v2754_v62 = vld [vmem:[%s2651_s24 + $0x8] sm:$0xff]   ;;  %v2416_v63 = vld [vmem:[%s3342_s1 + $0x20] sm:$0xff]  ;;  %v766_v4 = vunpack.c.l.b16 %v727_v61 }
  0x19   : > { %2535 = vmatpush.bf16.msra.mxu3 %v2424_v6  ;;  %686 = vmatpush.bf16.msra.mxu2 %v2432_v7  ;;  %v419_v1 = vshll.u32 %v2740_v56, 16  ;;  %v2444_v2 = vld [vmem:[%s3342_s1 + $0xe0] sm:$0xff]  ;;  %v767_v5 = vunpack.c.l.b16 %v2754_v62  ;;  %v393_v6 = vor.u32 %v391_v60, %v389_v34  ;;  %v2415_v7 = vld [vmem:[%s3342_s1 + $0x18] sm:$0xff]  ;;  %v2442_v23 = vld [vmem:[%s3342_s1 + $0xd0] sm:$0xff] }
  0x1a   : > { %v2452_v3 = vld [vmem:[%s3342_s1 + $0x120] sm:$0xff]  ;;  %v2451_v15 = vld [vmem:[%s3342_s1 + $0x118] sm:$0xff]  ;;  %v2450_v24 = vld [vmem:[%s3342_s1 + $0x110] sm:$0xff] }
  0x1b   : > { %v777_v16 = vpack.c.b16 %v767_v5, %v766_v4  ;;  %v398_v18 = vsel %vm378_vm0, %v393_v6, %v2692_v25  ;;  %v2473_v30 = vld [vmem:[%s3342_s1 + $0x1a8] sm:$0xff]  ;;  %v2472_v38 = vld [vmem:[%s3342_s1 + $0x1a0] sm:$0xff]  ;;  %v2483_v42 = vld [vmem:[%s3342_s1 + $0x1f8] sm:$0xff] }
  0x1c   : > { %480 = vmatpush.bf16.msra.mxu0 %v2423_v8  ;;  %2536 = vmatpush.bf16.msra.mxu1 %v2423_v8  ;;  %v2449_v33 = vld [vmem:[%s3342_s1 + $0x108] sm:$0xff]  ;;  %v2491_v46 = vld [vmem:[%s3342_s1 + $0x238] sm:$0xff]  ;;  %v2488_v4 = vld [vmem:[%s3342_s1 + $0x220] sm:$0xff] }
  0x1d   : > { %2537 = vmatpush.bf16.msra.mxu3 %v2423_v8  ;;  %687 = vmatpush.bf16.msra.mxu2 %v2431_v12  ;;  %v417_v8 = vor.u32 %v415_v0, %v413_v39  ;;  %v421_v12 = vrot.slane %v419_v1, 1  ;;  %v914_v25 = vshrl.u32 %v777_v16, 16  ;;  %v917_v26 = vshll.u32 %v777_v16, 16  ;;  %v2412_v39 = vld [vmem:[%s3342_s1] sm:$0xff]  ;;  %v2461_v60 = vld [vmem:[%s3342_s1 + $0x168] sm:$0xff]  ;;  %v2471_v61 = vld [vmem:[%s3342_s1 + $0x198] sm:$0xff] }
  0x1e   : > { %v783_v47 = vrot.slane %v777_v16, 1  ;;  %v2480_v0 = vld [vmem:[%s3342_s1 + $0x1e0] sm:$0xff]  ;;  %v2479_v6 = vld [vmem:[%s3342_s1 + $0x1d8] sm:$0xff]  ;;  %v626_v16 = vrot.slane %v2680_v17, 1 }
  0x1f   : > { %v422_v21 = vsel %vm378_vm0, %v417_v8, %v421_v12  ;;  %v916_v34 = vrot.slane %v914_v25, 1  ;;  %v919_v35 = vrot.slane %v917_v26, 2  ;;  %v2459_v12 = vld [vmem:[%s3342_s1 + $0x158] sm:$0xff]  ;;  %v2458_v25 = vld [vmem:[%s3342_s1 + $0x150] sm:$0xff]  ;;  %v2469_v26 = vld [vmem:[%s3342_s1 + $0x188] sm:$0xff] }
  0x20   : > { %481 = vmatpush.bf16.msra.mxu0 %v2422_v14  ;;  %2538 = vmatpush.bf16.msra.mxu1 %v2422_v14 }
  0x21   : > { %2539 = vmatpush.bf16.msra.mxu3 %v2422_v14  ;;  %688 = vmatpush.bf16.msra.mxu2 %v2430_v19  ;;  %v2443_v14 = vld [vmem:[%s3342_s1 + $0xd8] sm:$0xff]  ;;  %v2782_v19 = vld [vmem:[%s2651_s24 + $0xc] sm:$0xff] }
  0x22   : > { %v922_v27 = vshrl.u32 %v2782_v19, 16  ;;  %v925_v28 = vshll.u32 %v2782_v19, 16 }
  0x24   : > { %482 = vmatpush.bf16.msra.mxu0 %v2421_v22  ;;  %2540 = vmatpush.bf16.msra.mxu1 %v2421_v22  ;;  %v924_v36 = vrot.slane %v922_v27, 1  ;;  %v2486_v27 = vld [vmem:[%s3342_s1 + $0x210] sm:$0xff] }
  0x25   : > { %2541 = vmatpush.bf16.msra.mxu3 %v2421_v22  ;;  %689 = vmatpush.bf16.msra.mxu2 %v2429_v31  ;;  %v2414_v22 = vld [vmem:[%s3342_s1 + $0x10] sm:$0xff]  ;;  %v2413_v31 = vld [vmem:[%s3342_s1 + $0x8] sm:$0xff] }
  0x28   : > { %483 = vmatpush.bf16.msra.mxu0 %v2420_v32  ;;  %2542 = vmatpush.bf16.msra.mxu1 %v2420_v32 }
  0x29   : > { %2543 = vmatpush.bf16.msra.mxu3 %v2420_v32  ;;  %690 = vmatpush.bf16.msra.mxu2 %v2428_v45  ;;  %v2441_v32 = vld [vmem:[%s3342_s1 + $0xc8] sm:$0xff] }
  0x2b   : > { %484 = vmatmul.bf16.vlgmr.msra.gmra.mxu0 %v390_v43  ;;  %494 = vmatmul.bf16.vlgmr.msra.gmra.mxu1 %v406_v44  ;;  %v2463_v43 = vld [vmem:[%s3342_s1 + $0x178] sm:$0xff]  ;;  %v920_v44 = vor.u32 %v919_v35, %v916_v34  ;;  %v2920_v34 = vld [vmem:[%s2651_s24 + $0x24] sm:$0xff]  ;;  %v628_v35 = vrot.slane %v2740_v56, 1 }
  0x2c   : > { %563 = vmatpush.bf16.msrb.mxu1 %v2419_v37  ;;  %1019 = vmatpush.bf16.msrb.mxu0 %v2455_v41  ;;  %v927_v37 = vrot.slane %v925_v28, 2  ;;  %v2448_v41 = vld [vmem:[%s3342_s1 + $0x100] sm:$0xff]  ;;  %v2477_v28 = vld [vmem:[%s3342_s1 + $0x1c8] sm:$0xff] }
  0x2d   : > { %847 = vmatpush.bf16.msrb.mxu3 %v2447_v40  ;;  %1313 = vmatpush.bf16.msrb.mxu2 %v2475_v51  ;;  %v2440_v40 = vld [vmem:[%s3342_s1 + $0xc0] sm:$0xff]  ;;  %v2462_v51 = vld [vmem:[%s3342_s1 + $0x170] sm:$0xff] }
  0x2e   : > { %499 = vmatmul.bf16.vlgmr.msra.gmra.mxu3 %v414_v48  ;;  %691 = vmatmul.bf16.vlgmr.msra.gmra.mxu2 %v621_v54  ;;  %v928_v45 = vor.u32 %v927_v37, %v924_v36  ;;  %v784_v48 = vrot.slane %v2782_v19, 1  ;;  %v2457_v36 = vld [vmem:[%s3342_s1 + $0x148] sm:$0xff]  ;;  %v2468_v56 = vld [vmem:[%s3342_s1 + $0x180] sm:$0xff] }
  0x30   : > { %564 = vmatpush.bf16.msrb.mxu1 %v2418_v49  ;;  %1020 = vmatpush.bf16.msrb.mxu0 %v2454_v53  ;;  %v2482_v49 = vld [vmem:[%s3342_s1 + $0x1f0] sm:$0xff]  ;;  %v929_v50 = vsel %vm912_vm2, %v920_v44, %v928_v45  ;;  %v624_v53 = vrot.slane %v2666_v11, 1  ;;  %v785_v54 = vsel %vm618_vm1, %v783_v47, %v784_v48  ;;  %v1233_v47 = vunpack.c.h.b16 %v2754_v62 }
  0x31   : > { %848 = vmatpush.bf16.msrb.mxu3 %v2446_v52  ;;  %1314 = vmatpush.bf16.msrb.mxu2 %v2474_v57  ;;  %v2845_v52 = vld [vmem:[%s2651_s24 + $0x14] sm:$0xff] }
  0x32   : > { %v931_v57 = vshrl.u32 %v2845_v52, 16  ;;  %v786_v8 = vrot.slane %v2845_v52, 1 }
  0x34   : > { %565 = vmatpush.bf16.msrb.mxu1 %v2417_v55  ;;  %1021 = vmatpush.bf16.msrb.mxu0 %v2453_v59  ;;  %v2490_v55 = vld [vmem:[%s3342_s1 + $0x230] sm:$0xff]  ;;  %v625_v59 = vsel %vm618_vm1, %v622_v20, %v624_v53  ;;  %v933_v1 = vrot.slane %v931_v57, 1 }
  0x35   : > { %849 = vmatpush.bf16.msrb.mxu3 %v2445_v58  ;;  %1315 = vmatpush.bf16.msrb.mxu2 %v2473_v30  ;;  %v934_v58 = vshll.u32 %v2845_v52, 16 }
  0x38   : > { %566 = vmatpush.bf16.msrb.mxu1 %v2416_v63  ;;  %1022 = vmatpush.bf16.msrb.mxu0 %v2452_v3  ;;  %v2489_v63 = vld [vmem:[%s3342_s1 + $0x228] sm:$0xff]  ;;  %v2460_v3 = vld [vmem:[%s3342_s1 + $0x160] sm:$0xff] }
  0x39   : > { %850 = vmatpush.bf16.msrb.mxu3 %v2444_v2  ;;  %1316 = vmatpush.bf16.msrb.mxu2 %v2472_v38  ;;  %v936_v2 = vrot.slane %v934_v58, 2  ;;  %v949_v38 = vshrl.u32 %v2920_v34, 16 }
  0x3b   : > { %489 = vmatmul.bf16.gmra.mxu0 %v398_v18  ;;  %v787_v18 = vsel %vm618_vm1, %v784_v48, %v786_v8  ;;  %v951_v44 = vrot.slane %v949_v38, 1  ;;  %v891_v48 = vld [vmem:[%s2651_s24 + $0x2c] sm:$0x3] }
  0x3c   : > { %567 = vmatpush.bf16.msrb.mxu1 %v2415_v7  ;;  %1023 = vmatpush.bf16.msrb.mxu0 %v2451_v15  ;;  %v937_v7 = vor.u32 %v936_v2, %v933_v1  ;;  %v2888_v15 = vld [vmem:[%s2651_s24 + $0x1c] sm:$0xff] }
  0x3d   : > { %851 = vmatpush.bf16.msrb.mxu3 %v2443_v14  ;;  %1317 = vmatpush.bf16.msrb.mxu2 %v2471_v61  ;;  %v940_v20 = vshrl.u32 %v2888_v15, 16  ;;  %v737_v61 = vld [vmem:[%s2651_s24 + $0x2c] sm:$0x1] }
  0x3e   : > { %504 = vmatmul.bf16.gmra.mxu3 %v422_v21  ;;  %696 = vmatmul.bf16.gmra.mxu2 %v623_v29  ;;  %v938_v14 = vsel %vm912_vm2, %v928_v45, %v937_v7  ;;  %v943_v21 = vshll.u32 %v2888_v15, 16  ;;  %v776_v1 = vunpack.c.l.b16 %v737_v61  ;;  %v1090_v61 = vrot.slane %v2888_v15, 2 }
  0x3f   : > { %v942_v29 = vrot.slane %v940_v20, 1 }
  0x40   : > { %568 = vmatpush.bf16.msrb.mxu1 %v2414_v22  ;;  %1024 = vmatpush.bf16.msrb.mxu0 %v2450_v24  ;;  %v627_v22 = vsel %vm618_vm1, %v624_v53, %v626_v16  ;;  %v2478_v24 = vld [vmem:[%s3342_s1 + $0x1d0] sm:$0xff]  ;;  %v945_v30 = vrot.slane %v943_v21, 2  ;;  %v1529_v21 = vld [vmem:[%s2651_s24 + $0x8] sm:$0x8] }
  0x41   : > { %852 = vmatpush.bf16.msrb.mxu3 %v2442_v23  ;;  %v2487_v23 = vld [vmem:[%s3342_s1 + $0x218] sm:$0xff] }
  0x44   : > { %569 = vmatpush.bf16.msrb.mxu1 %v2413_v31  ;;  %1025 = vmatpush.bf16.msrb.mxu0 %v2449_v33  ;;  %v946_v31 = vor.u32 %v945_v30, %v942_v29 }
  0x45   : > { %853 = vmatpush.bf16.msrb.mxu3 %v2441_v32  ;;  %v788_v32 = vrot.slane %v2888_v15, 1 }
  0x46   : > { %v947_v33 = vsel %vm912_vm2, %v937_v7, %v946_v31  ;;  %v2963_v7 = vld [vmem:[%s2651_s24 + $0x18] sm:$0xff] }
  0x47   : > { %v789_v37 = vsel %vm618_vm1, %v786_v8, %v788_v32 }
  0x48   : > { %570 = vmatpush.bf16.msrb.mxu1 %v2412_v39  ;;  %1026 = vmatpush.bf16.msrb.mxu0 %v2448_v41  ;;  %v952_v39 = vshll.u32 %v2920_v34, 16  ;;  %v1193_v41 = vld [vmem:[%s2651_s24 + $0x8] sm:$0xc] }
  0x49   : > { %854 = vmatpush.bf16.msrb.mxu3 %v2440_v40  ;;  %v2485_v40 = vld [vmem:[%s3342_s1 + $0x208] sm:$0xff] }
  0x4a   : > { %v954_v45 = vrot.slane %v952_v39, 2 }
  0x4b   : > { %571 = vmatmul.bf16.vlgmr.msrb.gmra.mxu1 %v2663_v10  ;;  %1027 = vmatmul.bf16.vlgmr.msrb.gmra.mxu0 %v929_v50  ;;  %v2481_v10 = vld [vmem:[%s3342_s1 + $0x1e8] sm:$0xff]  ;;  %v910_v50 = vunpack.c.l.b16 %v891_v48 }
  0x4c   : > { %1149 = vmatpush.bf16.msra.mxu1 %v2463_v43  ;;  %1615 = vmatpush.bf16.msra.mxu0 %v2491_v46  ;;  %v2456_v43 = vld [vmem:[%s3342_s1 + $0x140] sm:$0xff]  ;;  %v1232_v46 = vunpack.c.l.b16 %v1193_v41  ;;  %v1400_v41 = vshll.u32 %v2963_v7, 16 }
  0x4d   : > { %1485 = vmatpush.bf16.msra.mxu3 %v2483_v42  ;;  %v2476_v42 = vld [vmem:[%s3342_s1 + $0x1c0] sm:$0xff]  ;;  %v2954_v57 = vpack.c.b16 %v910_v50, %v910_v50 }
  0x4e   : > { %855 = vmatmul.bf16.vlgmr.msrb.gmra.mxu3 %v785_v54  ;;  %701 = vmatmul.bf16.gmra.mxu2 %v625_v59  ;;  %v1243_v53 = vpack.c.b16 %v1233_v47, %v1232_v46  ;;  %v790_v54 = vrot.slane %v2920_v34, 1  ;;  %v2991_v46 = vld [vmem:[%s2651_s24 + $0x28] sm:$0xff] }
  0x50   : > { %1150 = vmatpush.bf16.msra.mxu1 %v2462_v51  ;;  %1616 = vmatpush.bf16.msra.mxu0 %v2490_v55  ;;  %v2946_v51 = vld [vmem:[%s2651_s24 + $0x10] sm:$0xff]  ;;  %v2484_v55 = vld [vmem:[%s3342_s1 + $0x200] sm:$0xff]  ;;  %v1249_v58 = vrot.slane %v1243_v53, 2 }
  0x51   : > { %1486 = vmatpush.bf16.msra.mxu3 %v2482_v49  ;;  %v955_v49 = vor.u32 %v954_v45, %v951_v44  ;;  %v1250_v59 = vrot.slane %v2946_v51, 2  ;;  %v1402_v44 = vrot.slane %v1400_v41, 3  ;;  %v1554_v45 = vrot.slane %v2963_v7, 3 }
  0x54   : > { %1151 = vmatpush.bf16.msra.mxu1 %v2461_v60  ;;  %1617 = vmatpush.bf16.msra.mxu0 %v2489_v63  ;;  %v791_v60 = vsel %vm618_vm1, %v788_v32, %v790_v54  ;;  %v958_v63 = vshrl.u32 %v2954_v57, 16 }
  0x55   : > { %1487 = vmatpush.bf16.msra.mxu3 %v2481_v10  ;;  %v956_v10 = vsel %vm912_vm2, %v946_v31, %v955_v49 }
  0x56   : > { %v960_v2 = vrot.slane %v958_v63, 1 }
  0x58   : > { %1152 = vmatpush.bf16.msra.mxu1 %v2460_v3  ;;  %1618 = vmatpush.bf16.msra.mxu0 %v2488_v4  ;;  %v782_v4 = vpack.c.b16 %v776_v1, %v776_v1 }
  0x59   : > { %1488 = vmatpush.bf16.msra.mxu3 %v2480_v0  ;;  %v1251_v0 = vsel %vm1084_vm3, %v1249_v58, %v1250_v59 }
  0x5a   : > { %v792_v8 = vrot.slane %v782_v4, 1 }
  0x5b   : > { %576 = vmatmul.bf16.gmra.mxu1 %v2672_v13  ;;  %1032 = vmatmul.bf16.gmra.mxu0 %v938_v14  ;;  %v2470_v13 = vld [vmem:[%s3342_s1 + $0x190] sm:$0xff] }
  0x5c   : > { %1153 = vmatpush.bf16.msra.mxu1 %v2459_v12  ;;  %1318 = vmatpush.bf16.msrb.mxu2 %v2470_v13  ;;  %v1063_v12 = vld [vmem:[%s2651_s24 + $0x4] sm:$0xc]  ;;  %v793_v20 = vsel %vm618_vm1, %v790_v54, %v792_v8  ;;  %v1548_v13 = vunpack.c.l.b16 %v1529_v21  ;;  %v1415_v21 = vshrl.u32 %v2991_v46, 16 }
  0x5d   : > { %1489 = vmatpush.bf16.msra.mxu3 %v2479_v6  ;;  %1619 = vmatpush.bf16.msra.mxu0 %v2487_v23 }
  0x5e   : > { %860 = vmatmul.bf16.gmra.mxu3 %v787_v18  ;;  %706 = vmatmul.bf16.gmra.mxu2 %v627_v22  ;;  %v1252_v18 = vrot.slane %v2963_v7, 2  ;;  %v1549_v29 = vpack.c.b16 %v1233_v47, %v1548_v13 }
  0x60   : > { %1154 = vmatpush.bf16.msra.mxu1 %v2458_v25  ;;  %1319 = vmatpush.bf16.msrb.mxu2 %v2469_v26  ;;  %v1253_v23 = vsel %vm1084_vm3, %v1250_v59, %v1252_v18  ;;  %v1383_v25 = vshll.u32 %v1243_v53, 16  ;;  %v1391_v26 = vshll.u32 %v2946_v51, 16 }
  0x61   : > { %1490 = vmatpush.bf16.msra.mxu3 %v2478_v24  ;;  %1620 = vmatpush.bf16.msra.mxu0 %v2486_v27  ;;  %v1380_v24 = vshrl.u32 %v1243_v53, 16 }
  0x62   : > { %v1385_v31 = vrot.slane %v1383_v25, 3  ;;  %v1393_v62 = vrot.slane %v1391_v26, 3  ;;  %v1417_v25 = vrot.slane %v1415_v21, 2 }
  0x63   : > { %v1382_v30 = vrot.slane %v1380_v24, 2  ;;  %v1092_v24 = vrot.slane %v2920_v34, 2 }
  0x64   : > { %1155 = vmatpush.bf16.msra.mxu1 %v2457_v36  ;;  %1320 = vmatpush.bf16.msrb.mxu2 %v2468_v56 }
  0x65   : > { %1491 = vmatpush.bf16.msra.mxu3 %v2477_v28  ;;  %1621 = vmatpush.bf16.msra.mxu0 %v2485_v40  ;;  %v1086_v28 = vrot.slane %v2782_v19, 2  ;;  %v1397_v40 = vshrl.u32 %v2963_v7, 16 }
  0x68   : > { %1156 = vmatpush.bf16.msra.mxu1 %v2456_v43  ;;  %v1399_v43 = vrot.slane %v1397_v40, 2 }
  0x69   : > { %1492 = vmatpush.bf16.msra.mxu3 %v2476_v42  ;;  %1622 = vmatpush.bf16.msra.mxu0 %v2484_v55  ;;  %v1088_v42 = vrot.slane %v2845_v52, 2 }
  0x6a   : > { %v1403_v48 = vor.u32 %v1402_v44, %v1399_v43  ;;  %v1094_v44 = vrot.slane %v2954_v57, 2 }
  0x6b   : > { %581 = vmatmul.bf16.gmra.mxu1 %v2660_v9  ;;  %1037 = vmatmul.bf16.gmra.mxu0 %v947_v33  ;;  %v629_v9 = vsel %vm618_vm1, %v626_v16, %v628_v35  ;;  %v1082_v16 = vunpack.c.l.b16 %v1063_v12  ;;  %v1552_v33 = vrot.slane %v2946_v51, 3  ;;  %v2979_v35 = vld [vmem:[%s2651_s24 + $0x20] sm:$0xff]  ;;  %v1089_v47 = vsel %vm1084_vm3, %v1086_v28, %v1088_v42 }
  0x6c   : > { %v1254_v39 = vrot.slane %v2979_v35, 2  ;;  %v1406_v54 = vshrl.u32 %v2979_v35, 16  ;;  %v1409_v55 = vshll.u32 %v2979_v35, 16  ;;  %v1091_v4 = vsel %vm1084_vm3, %v1088_v42, %v1090_v61 }
  0x6d   : > { %v1083_v22 = vpack.c.b16 %v767_v5, %v1082_v16  ;;  %v1551_v5 = vrot.slane %v1549_v29, 3  ;;  %v1555_v50 = vsel %vm1550_vm4, %v1552_v33, %v1554_v45 }
  0x6e   : > { %865 = vmatmul.bf16.gmra.mxu3 %v789_v37  ;;  %711 = vmatmul.bf16.gmra.mxu2 %v629_v9  ;;  %v1386_v37 = vor.u32 %v1385_v31, %v1382_v30  ;;  %v1255_v56 = vsel %vm1084_vm3, %v1252_v18, %v1254_v39  ;;  %v1408_v63 = vrot.slane %v1406_v54, 2  ;;  %v1093_v30 = vsel %vm1084_vm3, %v1090_v61, %v1092_v24 }
  0x6f   : > { %v1085_v27 = vrot.slane %v1083_v22, 2  ;;  %v1553_v19 = vsel %vm1550_vm4, %v1551_v5, %v1552_v33  ;;  %v1418_v22 = vshll.u32 %v2991_v46, 16 }
  0x71   : > { %v1087_v36 = vsel %vm1084_vm3, %v1085_v27, %v1086_v28  ;;  %v1357_v27 = vld [vmem:[%s2651_s24 + $0x30] sm:$0x7]  ;;  %v1558_v28 = vrot.slane %v2991_v46, 3 }
  0x7b   : > { %586 = vmatmul.bf16.gmra.mxu1 %v2666_v11  ;;  %1042 = vmatmul.bf16.gmra.mxu0 %v956_v10  ;;  %v961_v11 = vshll.u32 %v2954_v57, 16  ;;  %v1203_v10 = vld [vmem:[%s2651_s24 + $0x30] sm:$0x3] }
  0x7d   : > { %v963_v3 = vrot.slane %v961_v11, 2  ;;  %v1411_v11 = vrot.slane %v1409_v55, 3 }
  0x7e   : > { %870 = vmatmul.bf16.gmra.mxu3 %v791_v60  ;;  %1321 = vmatmul.bf16.vlgmr.msrb.gmra.mxu2 %v1251_v0  ;;  %v1242_v60 = vunpack.c.l.b16 %v1203_v10 }
  0x7f   : > { %v964_v6 = vor.u32 %v963_v3, %v960_v2  ;;  %v1556_v2 = vrot.slane %v2979_v35, 3 }
  0x80   : > { %v1248_v3 = vpack.c.b16 %v1242_v60, %v1242_v60 }
  0x81   : > { %v965_v14 = vsel %vm912_vm2, %v955_v49, %v964_v6  ;;  %v1412_v6 = vor.u32 %v1411_v11, %v1408_v63  ;;  %v1557_v12 = vsel %vm1550_vm4, %v1554_v45, %v1556_v2  ;;  %v1559_v35 = vsel %vm1550_vm4, %v1556_v2, %v1558_v28 }
  0x83   : > { %v1413_v15 = vsel %vm1378_vm5, %v1403_v48, %v1412_v6 }
  0x8b   : > { %591 = vmatmul.bf16.gmra.mxu1 %v2680_v17  ;;  %1047 = vmatmul.bf16.gmra.mxu0 %v965_v14  ;;  %v1388_v17 = vshrl.u32 %v2946_v51, 16  ;;  %v1256_v51 = vrot.slane %v2991_v46, 2  ;;  %v1258_v14 = vrot.slane %v1248_v3, 2 }
  0x8d   : > { %v1390_v32 = vrot.slane %v1388_v17, 2  ;;  %v1257_v52 = vsel %vm1084_vm3, %v1254_v39, %v1256_v51  ;;  %v1259_v18 = vsel %vm1084_vm3, %v1256_v51, %v1258_v14  ;;  %v1420_v17 = vrot.slane %v1418_v22, 3 }
  0x8e   : > { %875 = vmatmul.bf16.gmra.mxu3 %v793_v20  ;;  %1326 = vmatmul.bf16.gmra.mxu2 %v1253_v23  ;;  %v1095_v51 = vsel %vm1084_vm3, %v1092_v24, %v1094_v44 }
  0x8f   : > { %v1394_v38 = vor.u32 %v1393_v62, %v1390_v32  ;;  %v1421_v31 = vor.u32 %v1420_v17, %v1417_v25  ;;  %v1376_v32 = vunpack.c.l.b16 %v1357_v27 }
  0x91   : > { %v1395_v9 = vsel %vm1378_vm5, %v1386_v37, %v1394_v38  ;;  %v1404_v53 = vsel %vm1378_vm5, %v1394_v38, %v1403_v48  ;;  %v1422_v34 = vsel %vm1378_vm5, %v1412_v6, %v1421_v31  ;;  %v1377_v37 = vpack.c.b16 %v1376_v32, %v1376_v32 }
  0x93   : > { %v1424_v39 = vshrl.u32 %v1377_v37, 16 }
  0x95   : > { %v1426_v45 = vrot.slane %v1424_v39, 2 }
  0x9b   : > { %1157 = vmatmul.bf16.vlgmr.msra.gmra.mxu1 %v1087_v36  ;;  %1623 = vmatmul.bf16.vlgmr.msra.gmra.mxu0 %v1553_v19 }
  0x9e   : > { %1493 = vmatmul.bf16.vlgmr.msra.gmra.mxu3 %v1395_v9  ;;  %1331 = vmatmul.bf16.gmra.mxu2 %v1255_v56  ;;  %v1427_v9 = vshll.u32 %v1377_v37, 16 }
  0xa0   : > { %v1429_v46 = vrot.slane %v1427_v9, 3 }
  0xa8   : > { %v485_v49 = vpop.f32.mrf.mxu0  ;;  %v3004_v1 = vpop.f32.mrf.mxu1 }
  0xab   : > { %1162 = vmatmul.bf16.gmra.mxu1 %v1089_v47  ;;  %1628 = vmatmul.bf16.gmra.mxu0 %v1555_v50 }
  0xae   : > { %1498 = vmatmul.bf16.gmra.mxu3 %v1404_v53  ;;  %1336 = vmatmul.bf16.gmra.mxu2 %v1257_v52  ;;  %v1430_v53 = vor.u32 %v1429_v46, %v1426_v45 }
  0xb0   : > { %v487_v59 = vpop.f32.mrf.mxu0  ;;  %v3013_v20 = vpop.f32.mrf.mxu1  ;;  %v1431_v57 = vsel %vm1378_vm5, %v1421_v31, %v1430_v53 }
  0xb1   : > { %v3001_v58 = vpop.f32.mrf.mxu3  ;;  %v692_v0 = vpop.f32.mrf.mxu2 }
  0xb8   : > { %v490_v8 = vpop.f32.mrf.mxu0 }
  0xb9   : > { %v3008_v7 = vpop.f32.mrf.mxu3  ;;  %v694_v16 = vpop.f32.mrf.mxu2 }
  0xbb   : > { %1167 = vmatmul.bf16.gmra.mxu1 %v1091_v4  ;;  %1633 = vmatmul.bf16.gmra.mxu0 %v1557_v12 }
  0xbe   : > { %1503 = vmatmul.bf16.gmra.mxu3 %v1413_v15  ;;  %1341 = vmatmul.bf16.gmra.mxu2 %v1259_v18 }
  0xc0   : > { %v492_v23 = vpop.f32.mrf.mxu0 }
  0xc1   : > { %v3017_v13 = vpop.f32.mrf.mxu3  ;;  %v697_v26 = vpop.f32.mrf.mxu2 }
  0xc8   : > { %v572_v29 = vpop.f32.mrf.mxu1  ;;  %v1028_v33 = vpop.f32.mrf.mxu0 }
  0xc9   : > { %v573_v62 = vadd.f32 %v572_v29, %v485_v49  ;;  %v3023_v5 = vpop.f32.mrf.mxu3  ;;  %v699_v38 = vpop.f32.mrf.mxu2  ;;  %v1560_v49 = vrot.slane %v1377_v37, 3 }
  0xcb   : > { %1172 = vmatmul.bf16.gmra.mxu1 %v1093_v30  ;;  %v717_v36 = vadd.f32 %v692_v0, %v573_v62  ;;  %1638 = vmatmul.bf16.gmra.mxu0 %v1559_v35 }
  0xce   : > { %1508 = vmatmul.bf16.gmra.mxu3 %v1422_v34 }
  0xd0   : > { %v574_v19 = vpop.f32.mrf.mxu1  ;;  %v1030_v42 = vpop.f32.mrf.mxu0 }
  0xd1   : > { %v575_v56 = vadd.f32 %v574_v19, %v487_v59  ;;  %v856_v40 = vpop.f32.mrf.mxu3  ;;  %v702_v47 = vpop.f32.mrf.mxu2  ;;  %v1561_v59 = vsel %vm1550_vm4, %v1558_v28, %v1560_v49 }
  0xd2   : > { %v881_v41 = vadd.f32 %v856_v40, %v717_v36 }
  0xd3   : > { %v718_v43 = vadd.f32 %v694_v16, %v575_v56 }
  0xd4   : > { %v3028_v48 = vadd.f32 %v1028_v33, %v881_v41 }
  0xd8   : > { %v577_v50 = vpop.f32.mrf.mxu1  ;;  %v1033_v10 = vpop.f32.mrf.mxu0 }
  0xd9   : > { %v578_v52 = vadd.f32 %v577_v50, %v490_v8  ;;  %v858_v54 = vpop.f32.mrf.mxu3  ;;  %v704_v61 = vpop.f32.mrf.mxu2 }
  0xda   : > { %v882_v55 = vadd.f32 %v858_v54, %v718_v43 }
  0xdb   : > { %1177 = vmatmul.bf16.gmra.mxu1 %v1095_v51  ;;  %v719_v60 = vadd.f32 %v697_v26, %v578_v52  ;;  %1643 = vmatmul.bf16.gmra.mxu0 %v1561_v59 }
  0xdc   : > { %v3033_v63 = vadd.f32 %v1030_v42, %v882_v55 }
  0xde   : > { %1513 = vmatmul.bf16.gmra.mxu3 %v1431_v57 }
  0xe0   : > { %v579_v11 = vpop.f32.mrf.mxu1  ;;  %v1035_v4 = vpop.f32.mrf.mxu0 }
  0xe1   : > { %v580_v0 = vadd.f32 %v579_v11, %v492_v23  ;;  %v861_v2 = vpop.f32.mrf.mxu3  ;;  %v707_v12 = vpop.f32.mrf.mxu2 }
  0xe2   : > { %v883_v3 = vadd.f32 %v861_v2, %v719_v60 }
  0xe3   : > { %v720_v6 = vadd.f32 %v699_v38, %v580_v0 }
  0xe4   : > { %v3035_v8 = vadd.f32 %v1033_v10, %v883_v3 }
  0xe8   : > { %v582_v14 = vpop.f32.mrf.mxu1  ;;  %v1038_v21 = vpop.f32.mrf.mxu0 }
  0xe9   : > { %v583_v15 = vadd.f32 %v582_v14, %v3004_v1  ;;  %v863_v16 = vpop.f32.mrf.mxu3  ;;  %v709_v17 = vpop.f32.mrf.mxu2 }
  0xea   : > { %v884_v18 = vadd.f32 %v863_v16, %v720_v6  ;;  %v3061_v6 = vld [vmem:[%s3343_s2] ss:$0 sm:$0xff] }
  0xeb   : > { %v721_v22 = vadd.f32 %v702_v47, %v583_v15 }
  0xec   : > { %v3038_v24 = vadd.f32 %v1035_v4, %v884_v18 }
  0xf0   : > { %v584_v25 = vpop.f32.mrf.mxu1  ;;  %v1040_v28 = vpop.f32.mrf.mxu0 }
  0xf1   : > { %v585_v23 = vadd.f32 %v584_v25, %v3013_v20  ;;  %v866_v26 = vpop.f32.mrf.mxu3  ;;  %v712_v62 = vpop.f32.mrf.mxu2 }
  0xf2   : > { %v885_v27 = vadd.f32 %v866_v26, %v721_v22 }
  0xf3   : > { %v722_v29 = vadd.f32 %v704_v61, %v585_v23 }
  0xf4   : > { %v3041_v30 = vadd.f32 %v1038_v21, %v885_v27 }
  0xf8   : > { %v587_v31 = vpop.f32.mrf.mxu1  ;;  %v1043_v35 = vpop.f32.mrf.mxu0 }
  0xf9   : > { %v588_v32 = vadd.f32 %v587_v31, %v3001_v58  ;;  %v868_v1 = vpop.f32.mrf.mxu3  ;;  %v714_v56 = vpop.f32.mrf.mxu2 }
  0xfa   : > { %v886_v33 = vadd.f32 %v868_v1, %v722_v29 }
  0xfb   : > { %v723_v36 = vadd.f32 %v707_v12, %v588_v32 }
  0xfc   : > { %v3044_v34 = vadd.f32 %v1040_v28, %v886_v33 }
 0x100   : > { %v589_v37 = vpop.f32.mrf.mxu1  ;;  %v1045_v39 = vpop.f32.mrf.mxu0 }
 0x101   : > { %v590_v38 = vadd.f32 %v589_v37, %v3008_v7  ;;  %v871_v20 = vpop.f32.mrf.mxu3  ;;  %v1322_v47 = vpop.f32.mrf.mxu2 }
 0x102   : > { %v887_v19 = vadd.f32 %v871_v20, %v723_v36 }
 0x103   : > { %v724_v9 = vadd.f32 %v709_v17, %v590_v38 }
 0x104   : > { %v3047_v40 = vadd.f32 %v1043_v35, %v887_v19 }
 0x108   : > { %v592_v41 = vpop.f32.mrf.mxu1  ;;  %v1048_v44 = vpop.f32.mrf.mxu0 }
 0x109   : > { %v593_v58 = vadd.f32 %v592_v41, %v3017_v13  ;;  %v873_v42 = vpop.f32.mrf.mxu3  ;;  %v1324_v10 = vpop.f32.mrf.mxu2 }
 0x10a   : > { %v888_v43 = vadd.f32 %v873_v42, %v724_v9 }
 0x10b   : > { %v725_v45 = vadd.f32 %v712_v62, %v593_v58 }
 0x10c   : > { %v3050_v46 = vadd.f32 %v1045_v39, %v888_v43 }
 0x110   : > { %v594_v49 = vpop.f32.mrf.mxu1  ;;  %v1050_v53 = vpop.f32.mrf.mxu0 }
 0x111   : > { %v595_v7 = vadd.f32 %v594_v49, %v3023_v5  ;;  %v876_v50 = vpop.f32.mrf.mxu3  ;;  %v1327_v3 = vpop.f32.mrf.mxu2 }
 0x112   : > { %v889_v51 = vadd.f32 %v876_v50, %v725_v45 }
 0x113   : > { %v726_v52 = vadd.f32 %v714_v56, %v595_v7 }
 0x114   : > { %v3053_v54 = vadd.f32 %v1048_v44, %v889_v51 }
 0x118   : > { %v1158_v55 = vpop.f32.mrf.mxu1  ;;  %v1624_v60 = vpop.f32.mrf.mxu0 }
 0x119   : > { %v878_v59 = vpop.f32.mrf.mxu3  ;;  %v1183_v57 = vadd.f32 %v1158_v55, %v3028_v48  ;;  %v1329_v17 = vpop.f32.mrf.mxu2 }
 0x11a   : > { %v890_v13 = vadd.f32 %v878_v59, %v726_v52 }
 0x11b   : > { %v1347_v0 = vadd.f32 %v1322_v47, %v1183_v57 }
 0x11c   : > { %v3056_v61 = vadd.f32 %v1050_v53, %v890_v13 }
 0x120   : > { %v1160_v11 = vpop.f32.mrf.mxu1  ;;  %v1626_v4 = vpop.f32.mrf.mxu0 }
 0x121   : > { %v1494_v2 = vpop.f32.mrf.mxu3  ;;  %v1184_v12 = vadd.f32 %v1160_v11, %v3033_v63  ;;  %v1332_v35 = vpop.f32.mrf.mxu2 }
 0x122   : > { %v1519_v5 = vadd.f32 %v1494_v2, %v1347_v0 }
 0x123   : > { %v1348_v16 = vadd.f32 %v1324_v10, %v1184_v12 }
 0x124   : > { %v1649_v14 = vadd.f32 %v1624_v60, %v1519_v5 }
 0x126   : > { %v3065_v15 = vadd.f32 %v3061_v6, %v1649_v14 }
 0x128   : > { %v1163_v48 = vpop.f32.mrf.mxu1  ;;  %v1673_v18 = vmax.f32 %v3065_v15, 0.0  ;;  %v1629_v25 = vpop.f32.mrf.mxu0  ;;  %v1716_v15 = vld [vmem:[%s3344_s3 + $0x18] sm:$0xff] }
 0x129   : > { %v1496_v21 = vpop.f32.mrf.mxu3  ;;  %v1185_v23 = vadd.f32 %v1163_v48, %v3035_v8  ;;  %v1334_v41 = vpop.f32.mrf.mxu2 }
 0x12a   : > { %v1520_v22 = vadd.f32 %v1496_v21, %v1348_v16  ;;  %1683 = vrot.lane.b32.xlu0 %v1673_v18, %s2570_s22 }
 0x12b   : > { %v1349_v28 = vadd.f32 %v1327_v3, %v1185_v23 }
 0x12c   : > { %v1650_v63 = vadd.f32 %v1626_v4, %v1520_v22 }
 0x12e   : > { %v3073_v26 = vadd.f32 %v3061_v6, %v1650_v63 }
 0x130   : > { %v1165_v27 = vpop.f32.mrf.mxu1  ;;  %v1674_v29 = vmax.f32 %v3073_v26, 0.0  ;;  %v1631_v1 = vpop.f32.mrf.mxu0  ;;  %v1715_v26 = vld [vmem:[%s3344_s3 + $0x10] sm:$0xff] }
 0x131   : > { %v1499_v31 = vpop.f32.mrf.mxu3  ;;  %v1186_v62 = vadd.f32 %v1165_v27, %v3038_v24  ;;  %v1337_v52 = vpop.f32.mrf.mxu2 }
 0x132   : > { %v1521_v32 = vadd.f32 %v1499_v31, %v1349_v28  ;;  %1685 = vrot.lane.b32.xlu0 %v1674_v29, %s2570_s22 }
 0x133   : > { %v1350_v37 = vadd.f32 %v1329_v17, %v1186_v62 }
 0x134   : > { %v1651_v33 = vadd.f32 %v1629_v25, %v1521_v32 }
 0x136   : > { %v3081_v8 = vadd.f32 %v3061_v6, %v1651_v33 }
 0x138   : > { %v1168_v36 = vpop.f32.mrf.mxu1  ;;  %v1675_v38 = vmax.f32 %v3081_v8, 0.0  ;;  %v1634_v39 = vpop.f32.mrf.mxu0 }
 0x139   : > { %v1501_v20 = vpop.f32.mrf.mxu3  ;;  %v1187_v9 = vadd.f32 %v1168_v36, %v3041_v30  ;;  %v1339_v5 = vpop.f32.mrf.mxu2 }
 0x13a   : > { %v1522_v19 = vadd.f32 %v1501_v20, %v1350_v37  ;;  %1687 = vrot.lane.b32.xlu1 %v1675_v38, %s2570_s22 }
 0x13b   : > { %v1351_v42 = vadd.f32 %v1332_v35, %v1187_v9 }
 0x13c   : > { %v1652_v56 = vadd.f32 %v1631_v1, %v1522_v19 }
 0x13e   : > { %v3089_v24 = vadd.f32 %v3061_v6, %v1652_v56 }
 0x140   : > { %v1170_v58 = vpop.f32.mrf.mxu1  ;;  %v1676_v43 = vmax.f32 %v3089_v24, 0.0  ;;  %v1636_v47 = vpop.f32.mrf.mxu0 }
 0x141   : > { %v1504_v44 = vpop.f32.mrf.mxu3  ;;  %v1188_v49 = vadd.f32 %v1170_v58, %v3044_v34  ;;  %v1342_v63 = vpop.f32.mrf.mxu2  ;;  %v1763_v58 = vld [vmem:[%s3345_s4 + $0x78] sm:$0xff] }
 0x142   : > { %v1523_v45 = vadd.f32 %v1504_v44, %v1351_v42  ;;  %1689 = vrot.lane.b32.xlu1 %v1676_v43, %s2570_s22  ;;  %v1762_v42 = vld [vmem:[%s3345_s4 + $0x70] sm:$0xff]  ;;  %1768 = vmatpush.msrb.mxu1 %v1763_v58  ;;  %v1760_v44 = vld [vmem:[%s3345_s4 + $0x60] sm:$0xff] }
 0x143   : > { %v1352_v51 = vadd.f32 %v1334_v41, %v1188_v49  ;;  %v1757_v49 = vld [vmem:[%s3345_s4 + $0x48] sm:$0xff] }
 0x144   : > { %v1653_v7 = vadd.f32 %v1634_v39, %v1523_v45  ;;  %1769 = vmatpush.msrb.mxu1 %v1762_v42  ;;  %v1759_v45 = vld [vmem:[%s3345_s4 + $0x58] sm:$0xff] }
 0x146   : > { %v3097_v30 = vadd.f32 %v3061_v6, %v1653_v7  ;;  %v1756_v7 = vld [vmem:[%s3345_s4 + $0x40] sm:$0xff] }
 0x148   : > { %v1173_v50 = vpop.f32.mrf.mxu1  ;;  %v1677_v53 = vmax.f32 %v3097_v30, 0.0  ;;  %v1639_v60 = vpop.f32.mrf.mxu0  ;;  %v1803_v30 = vld [vmem:[%s3347_s6 + $0x70] sm:$0xff] }
 0x149   : > { %v1506_v55 = vpop.f32.mrf.mxu3  ;;  %v1189_v59 = vadd.f32 %v1173_v50, %v3047_v40  ;;  %v1344_v36 = vpop.f32.mrf.mxu2  ;;  %v1755_v50 = vld [vmem:[%s3345_s4 + $0x38] sm:$0xff] }
 0x14a   : > { %v1524_v10 = vadd.f32 %v1506_v55, %v1352_v51  ;;  %1691 = vrot.lane.b32.xlu2 %v1677_v53, %s2570_s22  ;;  %v1754_v51 = vld [vmem:[%s3345_s4 + $0x30] sm:$0xff]  ;;  %v1752_v55 = vld [vmem:[%s3345_s4 + $0x20] sm:$0xff] }
 0x14b   : > { %v1353_v11 = vadd.f32 %v1337_v52, %v1189_v59  ;;  %v1753_v52 = vld [vmem:[%s3345_s4 + $0x28] sm:$0xff] }
 0x14c   : > { %v1654_v13 = vadd.f32 %v1636_v47, %v1524_v10  ;;  %v1758_v47 = vld [vmem:[%s3345_s4 + $0x50] sm:$0xff]  ;;  %v1751_v10 = vld [vmem:[%s3345_s4 + $0x18] sm:$0xff] }
 0x14e   : > { %v3105_v34 = vadd.f32 %v3061_v6, %v1654_v13 }
 0x150   : > { %v1175_v57 = vpop.f32.mrf.mxu1  ;;  %v1678_v0 = vmax.f32 %v3105_v34, 0.0  ;;  %v1641_v40 = vpop.f32.mrf.mxu0 }
 0x151   : > { %v1509_v2 = vpop.f32.mrf.mxu3  ;;  %v1190_v4 = vadd.f32 %v1175_v57, %v3050_v46 }
 0x152   : > { %v1525_v3 = vadd.f32 %v1509_v2, %v1353_v11  ;;  %1693 = vrot.lane.b32.xlu2 %v1678_v0, %s2570_s22  ;;  %v1714_v11 = vld [vmem:[%s3344_s3 + $0x8] sm:$0xff] }
 0x153   : > { %v1354_v16 = vadd.f32 %v1339_v5, %v1190_v4 }
 0x154   : > { %v1655_v12 = vadd.f32 %v1639_v60, %v1525_v3 }
 0x156   : > { %v3113_v14 = vadd.f32 %v3061_v6, %v1655_v12  ;;  %v1713_v12 = vld [vmem:[%s3344_s3] sm:$0xff] }
 0x158   : > { %v1178_v48 = vpop.f32.mrf.mxu1  ;;  %v1679_v21 = vmax.f32 %v3113_v14, 0.0  ;;  %v1644_v27 = vpop.f32.mrf.mxu0  ;;  %v1720_v14 = vld [vmem:[%s3344_s3 + $0x38] sm:$0xff] }
 0x159   : > { %v1511_v22 = vpop.f32.mrf.mxu3  ;;  %v1191_v17 = vadd.f32 %v1178_v48, %v3053_v54  ;;  %v1749_v48 = vld [vmem:[%s3345_s4 + $0x8] sm:$0xff] }
 0x15a   : > { %v1526_v25 = vadd.f32 %v1511_v22, %v1354_v16  ;;  %1695 = vrot.lane.b32.xlu0 %v1679_v21, %s2570_s22  ;;  %v1748_v16 = vld [vmem:[%s3345_s4] sm:$0xff] }
 0x15b   : > { %v1355_v28 = vadd.f32 %v1342_v63, %v1191_v17  ;;  %v1717_v17 = vld [vmem:[%s3344_s3 + $0x20] sm:$0xff] }
 0x15c   : > { %v1656_v23 = vadd.f32 %v1641_v40, %v1526_v25 }
 0x15e   : > { %v3121_v46 = vadd.f32 %v3061_v6, %v1656_v23 }
 0x160   : > { %v1680_v31 = vmax.f32 %v3121_v46, 0.0  ;;  %v1180_v32 = vpop.f32.mrf.mxu1  ;;  %v1646_v9 = vpop.f32.mrf.mxu0 }
 0x161   : > { %v1514_v1 = vpop.f32.mrf.mxu3  ;;  %v1192_v33 = vadd.f32 %v1180_v32, %v3056_v61 }
 0x162   : > { %v1527_v62 = vadd.f32 %v1514_v1, %v1355_v28  ;;  %1697 = vrot.lane.b32.xlu1 %v1680_v31, %s2570_s22  ;;  %v1804_v28 = vld [vmem:[%s3347_s6 + $0x78] sm:$0xff] }
 0x163   : > { %v1356_v37 = vadd.f32 %v1344_v36, %v1192_v33  ;;  %1809 = vmatpush.msra.mxu2 %v1804_v28  ;;  %v1802_v33 = vld [vmem:[%s3347_s6 + $0x68] sm:$0xff]  ;;  %v1719_v36 = vld [vmem:[%s3344_s3 + $0x30] sm:$0xff] }
 0x164   : > { %v1657_v35 = vadd.f32 %v1644_v27, %v1527_v62 }
 0x165   : > { %1810 = vmatpush.msra.mxu2 %v1803_v30 }
 0x166   : > { %v3129_v54 = vadd.f32 %v3061_v6, %v1657_v35  ;;  %v1718_v35 = vld [vmem:[%s3344_s3 + $0x28] sm:$0xff] }
 0x167   : > { %1811 = vmatpush.msra.mxu2 %v1802_v33 }
 0x168   : > { %v1681_v20 = vmax.f32 %v3129_v54, 0.0  ;;  %v1722_v54 = vld [vmem:[%s3344_s3 + $0x48] sm:$0xff] }
 0x169   : > { %v1516_v19 = vpop.f32.mrf.mxu3 }
 0x16a   : > { %v1528_v39 = vadd.f32 %v1516_v19, %v1356_v37  ;;  %1699 = vrot.lane.b32.xlu2 %v1681_v20, %s2570_s22 }
 0x16c   : > { %v1658_v56 = vadd.f32 %v1646_v9, %v1528_v39  ;;  %v1800_v39 = vld [vmem:[%s3347_s6 + $0x58] sm:$0xff] }
 0x16e   : > { %v3136_v41 = vadd.f32 %v3061_v6, %v1658_v56  ;;  %v1761_v6 = vld [vmem:[%s3345_s4 + $0x68] sm:$0xff]  ;;  %v1799_v56 = vld [vmem:[%s3347_s6 + $0x50] sm:$0xff] }
 0x16f   : > { %1770 = vmatpush.msrb.mxu1 %v1761_v6  ;;  %v1798_v6 = vld [vmem:[%s3347_s6 + $0x48] sm:$0xff] }
 0x170   : > { %v1682_v61 = vmax.f32 %v3136_v41, 0.0  ;;  %v1794_v41 = vld [vmem:[%s3347_s6 + $0x28] sm:$0xff] }
 0x171   : > { %1771 = vmatpush.msrb.mxu1 %v1760_v44  ;;  %v1721_v44 = vld [vmem:[%s3344_s3 + $0x40] sm:$0xff] }
 0x172   : > { %1701 = vrot.lane.b32.xlu0 %v1682_v61, %s2570_s22 }
 0x173   : > { %1772 = vmatpush.msrb.mxu1 %v1759_v45 }
 0x175   : > { %1773 = vmatpush.msrb.mxu1 %v1758_v47  ;;  %v1797_v47 = vld [vmem:[%s3347_s6 + $0x40] sm:$0xff] }
 0x177   : > { %1774 = vmatpush.msrb.mxu1 %v1757_v49 }
 0x179   : > { %1775 = vmatpush.msrb.mxu1 %v1756_v7 }
 0x17b   : > { %1776 = vmatpush.msrb.mxu1 %v1755_v50  ;;  %v1796_v50 = vld [vmem:[%s3347_s6 + $0x38] sm:$0xff] }
 0x17d   : > { %1777 = vmatpush.msrb.mxu1 %v1754_v51 }
 0x17f   : > { %1778 = vmatpush.msrb.mxu1 %v1753_v52 }
 0x181   : > { %1779 = vmatpush.msrb.mxu1 %v1752_v55  ;;  %v1795_v55 = vld [vmem:[%s3347_s6 + $0x30] sm:$0xff] }
 0x183   : > { %1780 = vmatpush.msrb.mxu1 %v1751_v10 }
 0x19c   : > { %v1684_v59 = vpop.permute.xlu0 %1683 }
 0x19d   : > { %v1703_v5 = vadd.f32 %v1684_v59, %v1673_v18  ;;  %v1793_v59 = vld [vmem:[%s3347_s6 + $0x20] sm:$0xff] }
 0x19f   : > { %v3203_v18 = vmul.f32 %v1713_v12, %v1703_v5  ;;  %v1789_v12 = vld [vmem:[%s3347_s6] sm:$0xff] }
 0x1a4   : > { %v1686_v60 = vpop.permute.xlu0 %1685  ;;  %v1692_v2 = vpop.permute.xlu2 %1691 }
 0x1a5   : > { %v1704_v57 = vadd.f32 %v1686_v60, %v1674_v29  ;;  %v1707_v22 = vadd.f32 %v1692_v2, %v1677_v53  ;;  %v1792_v60 = vld [vmem:[%s3347_s6 + $0x18] sm:$0xff] }
 0x1a7   : > { %v3196_v29 = vmul.f32 %v1714_v11, %v1704_v57  ;;  %v3233_v32 = vmul.f32 %v1717_v17, %v1707_v22  ;;  %v1791_v11 = vld [vmem:[%s3347_s6 + $0x10] sm:$0xff] }
 0x1a9   : > { %v1733_v24 = vadd.f32 %v3196_v29, %v3203_v18 }
 0x1ac   : > { %v1688_v13 = vpop.permute.xlu1 %1687  ;;  %v1694_v23 = vpop.permute.xlu2 %1693 }
 0x1ad   : > { %v1705_v4 = vadd.f32 %v1688_v13, %v1675_v38  ;;  %v1750_v38 = vld [vmem:[%s3345_s4 + $0x10] sm:$0xff]  ;;  %v1708_v1 = vadd.f32 %v1694_v23, %v1678_v0  ;;  %v1801_v0 = vld [vmem:[%s3347_s6 + $0x60] sm:$0xff] }
 0x1ae   : > { %1781 = vmatpush.msrb.mxu1 %v1750_v38  ;;  %1812 = vmatpush.msra.mxu2 %v1801_v0 }
 0x1af   : > { %v3205_v8 = vmul.f32 %v1715_v26, %v1705_v4  ;;  %v2556_v26 = vld [vmem:[%s3346_s5] ss:$0 sm:$0xff] }
 0x1b0   : > { %1782 = vmatpush.msrb.mxu1 %v1749_v48  ;;  %1813 = vmatpush.msra.mxu2 %v1800_v39  ;;  %v2557_v48 = vld [vmem:[%s3348_s7] ss:$0 sm:$0xff] }
 0x1b1   : > { %v1734_v25 = vadd.f32 %v1733_v24, %v3205_v8 }
 0x1b2   : > { %1783 = vmatpush.msrb.mxu1 %v1748_v16  ;;  %1814 = vmatpush.msra.mxu2 %v1799_v56 }
 0x1b4   : > { %v1690_v3 = vpop.permute.xlu1 %1689  ;;  %1815 = vmatpush.msra.mxu2 %v1798_v6 }
 0x1b5   : > { %v1706_v40 = vadd.f32 %v1690_v3, %v1676_v43  ;;  %v1790_v3 = vld [vmem:[%s3347_s6 + $0x8] sm:$0xff] }
 0x1b6   : > { %1816 = vmatpush.msra.mxu2 %v1797_v47 }
 0x1b7   : > { %v3215_v43 = vmul.f32 %v1716_v15, %v1706_v40 }
 0x1b8   : > { %1817 = vmatpush.msra.mxu2 %v1796_v50 }
 0x1b9   : > { %v1735_v27 = vadd.f32 %v1734_v25, %v3215_v43 }
 0x1ba   : > { %1818 = vmatpush.msra.mxu2 %v1795_v55 }
 0x1bb   : > { %v1736_v37 = vadd.f32 %v1735_v27, %v3233_v32 }
 0x1bc   : > { %1819 = vmatpush.msra.mxu2 %v1794_v41 }
 0x1be   : > { %1820 = vmatpush.msra.mxu2 %v1793_v59 }
 0x1c0   : > { %1821 = vmatpush.msra.mxu2 %v1792_v60 }
 0x1c2   : > { %1822 = vmatpush.msra.mxu2 %v1791_v11 }
 0x1c4   : > { %v1700_v9 = vpop.permute.xlu2 %1699  ;;  %1823 = vmatpush.msra.mxu2 %v1790_v3 }
 0x1c5   : > { %v1711_v58 = vadd.f32 %v1700_v9, %v1681_v20 }
 0x1c6   : > { %1824 = vmatpush.msra.mxu2 %v1789_v12 }
 0x1c7   : > { %v3286_v49 = vmul.f32 %v1721_v44, %v1711_v58 }
 0x1cc   : > { %v1696_v63 = vpop.permute.xlu0 %1695 }
 0x1cd   : > { %v1709_v62 = vadd.f32 %v1696_v63, %v1679_v21  ;;  %v3257_v21 = vmul.f32 %v1718_v35, %v1708_v1 }
 0x1cf   : > { %v3259_v19 = vmul.f32 %v1719_v36, %v1709_v62  ;;  %v1737_v46 = vadd.f32 %v1736_v37, %v3257_v21 }
 0x1d1   : > { %v1738_v42 = vadd.f32 %v1737_v46, %v3259_v19 }
 0x1d4   : > { %v1698_v53 = vpop.permute.xlu1 %1697 }
 0x1d5   : > { %v1710_v34 = vadd.f32 %v1698_v53, %v1680_v31 }
 0x1d7   : > { %v3265_v31 = vmul.f32 %v1720_v14, %v1710_v34 }
 0x1d9   : > { %v1739_v45 = vadd.f32 %v1738_v42, %v3265_v31 }
 0x1db   : > { %v1740_v52 = vadd.f32 %v1739_v45, %v3286_v49 }
 0x1e4   : > { %v1702_v20 = vpop.permute.xlu0 %1701 }
 0x1e5   : > { %v1712_v7 = vadd.f32 %v1702_v20, %v1682_v61 }
 0x1e7   : > { %v3293_v51 = vmul.f32 %v1722_v54, %v1712_v7 }
 0x1e9   : > { %v1741_v10 = vadd.f32 %v1740_v52, %v3293_v51 }
 0x1eb   : > { %v1742_v61 = vrot.slane %v1741_v10, 4 }
 0x1ed   : > { %v1743_v13 = vadd.f32 %v1742_v61, %v1741_v10 }
 0x1ef   : > { %v1744_v57 = vrot.slane %v1743_v13, 2 }
 0x1f1   : > { %v1745_v2 = vadd.f32 %v1744_v57, %v1743_v13 }
 0x1f3   : > { %v1746_v5 = vrot.slane %v1745_v2, 1 }
 0x1f5   : > { %v1747_v4 = vadd.f32 %v1746_v5, %v1745_v2 }
 0x1f7   : > { %1784 = vmatmul.f32.vlgmr.msrb.gmra.mxu1 %v1747_v4 }
 0x274   : > { %v1785_v40 = vpop.f32.mrf.mxu1 }
 0x275   : > { %v1786_v15 = vadd.f32 %v2556_v26, %v1785_v40 }
 0x277   : > { %v1788_v38 = vmax.f32 %v1786_v15, 0.0 }
 0x279   : > { %1825 = vmatmul.f32.vlgmr.msra.gmra.mxu2 %v1788_v38 }
 0x2fc   : > { %v1826_v24 = vpop.f32.mrf.mxu2 }
 0x2fd   : > { %v1827_v16 = vadd.f32 %v2557_v48, %v1826_v24 }
 0x2ff   : > { %v2405_v22 = vmul.f32 -1.442695, %v1827_v16 }
 0x301   : > { %2558 = vpow2.f32 %v2405_v22 }
 0x307   : > { %v2559_v25 = vpop.eup %2558 }
 0x308   : > { %v1832_v17 = vadd.f32 1.0, %v2559_v25 }
 0x30a   : > { %2560 = vrcp.f32 %v1832_v17  ;;  %v1844_v28 = vand.u32 2147483648, %v1832_v17  ;;  %v1842_v53 = vand.u32 2147483647, %v1832_v17  ;;  %vm1838_vm7 = vweird.f32 %v1832_v17 }
 0x30c   : > { %v1845_v62 = vor.u32 1.1754944e-38, %v1844_v28  ;;  %vm1843_vm9 = vcmp.eq.f32.partialorder %v1842_v53, 8.507059e+37 }
 0x310   : > { %v2561_v23 = vpop.eup %2560 }
 0x311   : > { %v1834_v63 = vmul.f32 %v2561_v23, %v1832_v17  ;;  %vm1839_vm6 = vweird.f32 %v2561_v23 }
 0x312   : > { %vm1840_vm8 = vmor %vm1838_vm7, %vm1839_vm6 }
 0x313   : > { %v1835_v27 = vsub.f32 1.0, %v1834_v63 }
 0x315   : > { %v1836_v30 = vmul.f32 %v2561_v23, %v1835_v27 }
 0x317   : > { %v1837_v1 = vadd.f32 %v2561_v23, %v1836_v30 }
 0x319   : > { %v1841_v33 = vsel %vm1840_vm8, %v2561_v23, %v1837_v1 }
 0x31a   : > { %v1846_v35 = vsel %vm1843_vm9, %v1845_v62, %v1841_v33 }
 0x31b   : > { %v1848_v36 = vperm.slane %v1846_v35, 0 }
 0x31d   : > { %v1849_v37 = vmul.f32 %v1848_v36, %v3203_v18  ;;  %v1850_v34 = vmul.f32 %v1848_v36, %v3196_v29  ;;  %v1851_v0 = vmul.f32 %v1848_v36, %v3205_v8  ;;  %v1852_v14 = vmul.f32 %v1848_v36, %v3215_v43 }
 0x31e   : > { %v1853_v39 = vmul.f32 %v1848_v36, %v3233_v32  ;;  %v1854_v9 = vmul.f32 %v1848_v36, %v3257_v21  ;;  %v1855_v46 = vmul.f32 %v1848_v36, %v3259_v19  ;;  %v1856_v56 = vmul.f32 %v1848_v36, %v3265_v31 }
 0x31f   : > { %v1857_v18 = vmul.f32 %v1848_v36, %v3286_v49  ;;  %v1858_v29 = vmul.f32 %v1848_v36, %v3293_v51  ;;  %v2499_v58 = vpack.c.bf16 %v1850_v34, %v1849_v37  ;;  %v2504_v8 = vpack.c.bf16 %v1852_v14, %v1851_v0 }
 0x320   : > { %v2509_v42 = vpack.c.bf16 %v1854_v9, %v1853_v39  ;;  %v2514_v43 = vpack.c.bf16 %v1856_v56, %v1855_v46 }
 0x321   : > { %2500 = vst [vmem:[%s305_s15] sm:$0xff] %v2499_v58   ;;  %v2519_v6 = vpack.c.bf16 %v1858_v29, %v1857_v18 }
 0x322   : > { %2524 = vst [vmem:[%s305_s15 + $0x8] sm:$0xff] %v2504_v8  }
 0x323   : > { %2525 = vst [vmem:[%s305_s15 + $0x10] sm:$0xff] %v2509_v42  }
 0x324   : > { %2526 = vst [vmem:[%s305_s15 + $0x18] sm:$0xff] %v2514_v43  }
 0x325   : > { %2527 = vst [vmem:[%s305_s15 + $0x20] sm:$0xff] %v2519_v6  }
 0x326 PF: > { %s18_s27 = sadd.s32 1, %s2568_s27  }
 0x327   : > { %p15_p4 = scmp.ge.s32.totalorder %s18_s27, 4  }
 0x329   :  { %17 = sbr.rel (!%p15_p4) target bundleno = 1 (0x1), region = 90 }

</bundles_post_ra>
